<compile_context>
chip_gen: v6e
topology: v6e:2x2x1
jax: 0.10.0
libtpu: 0.0.40
codegen_flags: <defaults>
</compile_context>

<pallas_src>
import jax
import jax.numpy as jnp
from jax.experimental import pallas as pl
from jax.experimental.pallas import tpu as pltpu


def _sgns_onehot_kernel(cs_ref, os_ref, w_ref, b_ref, y_ref):
    """MXU one-hot gather path (small/medium vocab).

    cs_ref, os_ref : VMEM (TILE_B, 1) int32 — word ids (pre-clamped)
    w_ref, b_ref   : VMEM (V, D) f32        — whole tables, single resident copy
    y_ref          : VMEM (1, TILE_B) f32   — lane-dense output block
    """
    tile_b = cs_ref.shape[0]
    v = w_ref.shape[0]

    iota = jax.lax.broadcasted_iota(jnp.int32, (tile_b, v), 1)
    onehot_c = (iota == cs_ref[...]).astype(w_ref.dtype)          # (TILE_B, V)
    onehot_o = (iota == os_ref[...]).astype(b_ref.dtype)          # (TILE_B, V)

    # Row gather as two MXU matmuls (exact: one nonzero product per output).
    c = jnp.dot(onehot_c, w_ref[...], preferred_element_type=jnp.float32)
    o = jnp.dot(onehot_o, b_ref[...], preferred_element_type=jnp.float32)

    logits = jnp.sum(c * o, axis=-1)                              # (TILE_B,)
    y_ref[...] = jax.nn.sigmoid(logits)[None, :]                  # (1, TILE_B)


def _sgns_gather_kernel(cs_sref, os_sref, w_ref, b_ref, y_ref, prod_scr):
    """Scalar-gather fallback (large vocab, tables still VMEM resident).

    cs_sref, os_sref : SMEM (Bp,) int32 — scalar-prefetched, pre-clamped ids
    w_ref, b_ref     : VMEM (V, D) f32  — whole tables, single resident copy
    y_ref            : VMEM (1, TILE_B) f32
    prod_scr         : VMEM (TILE_B, D) f32 — fused c*o rows
    """
    tile_b = prod_scr.shape[0]
    base = pl.program_id(0) * tile_b

    def gather(r, carry):
        ci = cs_sref[base + r]
        oi = os_sref[base + r]
        # Fused multiply: one store per row (halves vst traffic vs two scratches).
        prod_scr[pl.ds(r, 1), :] = w_ref[pl.ds(ci, 1), :] * b_ref[pl.ds(oi, 1), :]
        return carry

    jax.lax.fori_loop(0, tile_b, gather, 0, unroll=16)

    logits = jnp.sum(prod_scr[...], axis=-1)                      # (TILE_B,)
    y_ref[...] = jax.nn.sigmoid(logits)[None, :]                  # (1, TILE_B)


def skip_gram_negative_sampling(cs, os, word_embs, bkp_word_embs,
                                *, tile_b=None, force_path=None):
    """Forward pass of Skip_Gram_With_Negative_Sampling via Pallas TPU kernels."""
    B = cs.shape[0]
    V, D = word_embs.shape

    # Adaptive batch tile: amortize the ~0.35us per-grid-step overhead, but
    # keep >= 2 grid steps when possible so the "parallel" axis can shard
    # across v7x's two TensorCores.
    if tile_b is None:
        tile_b = 128
        while tile_b < 512 and pl.cdiv(B, 2 * tile_b) >= 2:
            tile_b *= 2

    num_tiles = pl.cdiv(B, tile_b)
    Bp = num_tiles * tile_b

    # Clamp once here (hoisted out of the kernel's per-row scalar chain).
    # Note: PyTorch nn.Embedding would raise on OOB ids; we map them to valid
    # rows instead so a bad id can never trigger an unchecked OOB VMEM read.
    cs_i = jnp.clip(cs.astype(jnp.int32), 0, V - 1)
    os_i = jnp.clip(os.astype(jnp.int32), 0, V - 1)
    cs_i = jnp.zeros((Bp,), jnp.int32).at[:B].set(cs_i)
    os_i = jnp.zeros((Bp,), jnp.int32).at[:B].set(os_i)

    # VMEM budgeting: tables are a single resident copy each; the one-hot path
    # additionally materializes two (tile_b, V) one-hots and two (tile_b, D)
    # gathered-row intermediates.
    itemsize = jnp.dtype(word_embs.dtype).itemsize
    table_bytes = 2 * V * D * itemsize
    onehot_work = 2 * tile_b * V * 4 + 4 * tile_b * D * 4
    use_onehot = (table_bytes + onehot_work) <= (48 << 20)
    if force_path is not None:
        use_onehot = (force_path == "onehot")

    vmem_needed = table_bytes + (onehot_work if use_onehot else tile_b * D * 4) + (4 << 20)
    compiler_params = pltpu.CompilerParams(
        dimension_semantics=("parallel",),
        vmem_limit_bytes=int(min(max(vmem_needed, 32 << 20), 100 << 20)),
    )

    table_spec = pl.BlockSpec(memory_space=pltpu.MemorySpace.VMEM)  # whole array, 1 copy
    out_shape = jax.ShapeDtypeStruct((1, Bp), jnp.float32)

    if use_onehot:
        grid_spec = pltpu.PrefetchScalarGridSpec(
            num_scalar_prefetch=0,
            grid=(num_tiles,),
            in_specs=[
                pl.BlockSpec((tile_b, 1), lambda i: (i, 0)),   # cs ids
                pl.BlockSpec((tile_b, 1), lambda i: (i, 0)),   # os ids
                table_spec,                                    # word_embs
                table_spec,                                    # bkp_word_embs
            ],
            out_specs=pl.BlockSpec((1, tile_b), lambda i: (0, i)),
        )
        y2d = pl.pallas_call(
            _sgns_onehot_kernel,
            out_shape=out_shape,
            grid_spec=grid_spec,
            compiler_params=compiler_params,
        )(cs_i.reshape(Bp, 1), os_i.reshape(Bp, 1), word_embs, bkp_word_embs)
    else:
        grid_spec = pltpu.PrefetchScalarGridSpec(
            num_scalar_prefetch=2,
            grid=(num_tiles,),
            in_specs=[table_spec, table_spec],
            out_specs=pl.BlockSpec((1, tile_b), lambda i, cs_s, os_s: (0, i)),
            scratch_shapes=[pltpu.VMEM((tile_b, D), jnp.float32)],
        )
        y2d = pl.pallas_call(
            _sgns_gather_kernel,
            out_shape=out_shape,
            grid_spec=grid_spec,
            compiler_params=compiler_params,
        )(cs_i, os_i, word_embs, bkp_word_embs)

    return y2d.reshape(Bp)[:B]


if __name__ == "__main__":
    vocab_numbers = 512
    vector_size = 128
    batch = 256

    key = jax.random.PRNGKey(0)
    k_w, k_b, k_cs, k_os = jax.random.split(key, 4)

    # nn.Embedding default init: N(0, 1)
    word_embs = jax.random.normal(k_w, (vocab_numbers, vector_size), jnp.float32)
    bkp_word_embs = jax.random.normal(k_b, (vocab_numbers, vector_size), jnp.float32)

    cs = jax.random.randint(k_cs, (batch,), 0, vocab_numbers, jnp.int32)
    os_ = jax.random.randint(k_os, (batch,), 0, vocab_numbers, jnp.int32)

    # Pure-JAX reference.
    c_ref = jnp.take(word_embs, cs, axis=0)
    o_ref = jnp.take(bkp_word_embs, os_, axis=0)
    y_ref = jax.nn.sigmoid(jnp.sum(c_ref * o_ref, axis=1))

    # Primary path: MXU one-hot gather (selected automatically at this size).
    y = jax.block_until_ready(
        skip_gram_negative_sampling(cs, os_, word_embs, bkp_word_embs))
    assert y.shape == (batch,)
    assert jnp.allclose(y, y_ref, atol=1e-5, rtol=1e-5), (y, y_ref)

    # Fallback path: scalar-gather loop (used for large vocabularies).
    y_g = jax.block_until_ready(
        skip_gram_negative_sampling(cs, os_, word_embs, bkp_word_embs,
                                    force_path="gather"))
    assert jnp.allclose(y_g, y_ref, atol=1e-5, rtol=1e-5), (y_g, y_ref)

    print("KERNEL_OK")
</pallas_src>

<mosaic_0001>
module attributes {stable_mosaic.version = 11 : i64} {
  func.func @_sgns_onehot_kernel(%arg0: i32, %arg1: memref<128x1xi32, #tpu.memory_space<vmem>>, %arg2: memref<128x1xi32, #tpu.memory_space<vmem>>, %arg3: memref<512x128xf32, #tpu.memory_space<vmem>>, %arg4: memref<512x128xf32, #tpu.memory_space<vmem>>, %arg5: memref<1x128xf32, #tpu.memory_space<vmem>>) attributes {dimension_semantics = [#tpu.dimension_semantics<parallel>], iteration_bounds = array<i64: 2>, scalar_prefetch = 0 : i64, scratch_operands = 0 : i64, tpu.core_type = #tpu.core_type<tc>, window_params = [{transform_indices = @transform_0, window_bounds = array<i64: 128, 1>}, {transform_indices = @transform_1, window_bounds = array<i64: 128, 1>}, {pipeline_mode = #tpu.pipeline_mode<synchronous>, transform_indices = @transform_2, window_bounds = array<i64: 512, 128>}, {pipeline_mode = #tpu.pipeline_mode<synchronous>, transform_indices = @transform_3, window_bounds = array<i64: 512, 128>}, {transform_indices = @transform_4, window_bounds = array<i64: 1, 128>}]} {
    %0 = tpu.iota {dimensions = array<i32: 1>} : vector<128x512xi32>
    %c0 = arith.constant 0 : index
    %c0_0 = arith.constant 0 : index
    %1 = vector.load %arg1[%c0, %c0_0] : memref<128x1xi32, #tpu.memory_space<vmem>>, vector<128x1xi32>
    %2 = vector.broadcast %1 : vector<128x1xi32> to vector<128x512xi32>
    %3 = arith.cmpi eq, %0, %2 : vector<128x512xi32>
    %4 = arith.extui %3 : vector<128x512xi1> to vector<128x512xi32>
    %5 = arith.sitofp %4 : vector<128x512xi32> to vector<128x512xf32>
    %c0_1 = arith.constant 0 : index
    %c0_2 = arith.constant 0 : index
    %6 = vector.load %arg2[%c0_1, %c0_2] : memref<128x1xi32, #tpu.memory_space<vmem>>, vector<128x1xi32>
    %7 = vector.broadcast %6 : vector<128x1xi32> to vector<128x512xi32>
    %8 = arith.cmpi eq, %0, %7 : vector<128x512xi32>
    %9 = arith.extui %8 : vector<128x512xi1> to vector<128x512xi32>
    %10 = arith.sitofp %9 : vector<128x512xi32> to vector<128x512xf32>
    %c0_3 = arith.constant 0 : index
    %c0_4 = arith.constant 0 : index
    %11 = vector.load %arg3[%c0_3, %c0_4] : memref<512x128xf32, #tpu.memory_space<vmem>>, vector<512x128xf32>
    %cst = arith.constant dense<0.000000e+00> : vector<128x128xf32>
    %12 = tpu.matmul %5, %11, %cst {dimension_numbers = #tpu.dot_dimension_numbers<[1], [0], [0], [1], [0, 0, 1, 1], [], []>} : vector<128x512xf32>, vector<512x128xf32>, vector<128x128xf32> -> vector<128x128xf32>
    %c0_5 = arith.constant 0 : index
    %c0_6 = arith.constant 0 : index
    %13 = vector.load %arg4[%c0_5, %c0_6] : memref<512x128xf32, #tpu.memory_space<vmem>>, vector<512x128xf32>
    %cst_7 = arith.constant dense<0.000000e+00> : vector<128x128xf32>
    %14 = tpu.matmul %10, %13, %cst_7 {dimension_numbers = #tpu.dot_dimension_numbers<[1], [0], [0], [1], [0, 0, 1, 1], [], []>} : vector<128x512xf32>, vector<512x128xf32>, vector<128x128xf32> -> vector<128x128xf32>
    %15 = arith.mulf %12, %14 : vector<128x128xf32>
    %cst_8 = arith.constant dense<0.000000e+00> : vector<128xf32>
    %16 = vector.multi_reduction <add>, %15, %cst_8 [1] : vector<128x128xf32> to vector<128xf32>
    %17 = arith.negf %16 : vector<128xf32>
    %18 = math.exp %17 : vector<128xf32>
    %cst_9 = arith.constant 1.000000e+00 : f32
    %19 = vector.broadcast %cst_9 : f32 to vector<128xf32>
    %20 = arith.addf %19, %18 : vector<128xf32>
    %21 = arith.divf %19, %20 : vector<128xf32>
    %22 = vector.shape_cast %21 : vector<128xf32> to vector<1x128xf32>
    %c0_10 = arith.constant 0 : index
    %c0_11 = arith.constant 0 : index
    %23 = vector.load %arg5[%c0_10, %c0_11] : memref<1x128xf32, #tpu.memory_space<vmem>>, vector<1x128xf32>
    tpu.vector_store %arg5[%c0_10, %c0_11], %22 {strides = array<i32>} : memref<1x128xf32, #tpu.memory_space<vmem>>, vector<1x128xf32>,
    return
  }
  func.func @transform_0(%arg0: i32) -> (i32, i32) {
    %c0_i32 = arith.constant 0 : i32
    %c0_i32_0 = arith.constant 0 : i32
    return %arg0, %c0_i32 : i32, i32
  }
  func.func @transform_1(%arg0: i32) -> (i32, i32) {
    %c0_i32 = arith.constant 0 : i32
    %c0_i32_0 = arith.constant 0 : i32
    return %arg0, %c0_i32 : i32, i32
  }
  func.func @transform_2(%arg0: i32) -> (i32, i32) {
    %c0_i32 = arith.constant 0 : i32
    %c0_i32_0 = arith.constant 0 : i32
    %c0_i32_1 = arith.constant 0 : i32
    return %c0_i32, %c0_i32_0 : i32, i32
  }
  func.func @transform_3(%arg0: i32) -> (i32, i32) {
    %c0_i32 = arith.constant 0 : i32
    %c0_i32_0 = arith.constant 0 : i32
    %c0_i32_1 = arith.constant 0 : i32
    return %c0_i32, %c0_i32_0 : i32, i32
  }
  func.func @transform_4(%arg0: i32) -> (i32, i32) {
    %c0_i32 = arith.constant 0 : i32
    %c0_i32_0 = arith.constant 0 : i32
    return %c0_i32, %arg0 : i32, i32
  }
}

</mosaic_0001>

<bundles_post_ra>
// kernel: tpu_custom_call.1
= control target key start
LH: loop header
LB: loop body
LE: loop exit
PB: predicated region body
PF: predicated region fallthrough
CT: control target
= control target key end

     0   :  { %9 = vsyncpa [#allocation3], 0  ;;  %s3385_s0 = inlined_call_operand.vmem [shape: s32[256,1], index: 0, kind: input, shape index: {}]   ;;  %s3386_s1 = inlined_call_operand.vmem [shape: s32[256,1], index: 1, kind: input, shape index: {}]   ;;  %s3387_s2 = inlined_call_operand.vmem [shape: f32[512,128], index: 2, kind: input, shape index: {}]   ;;  %s3388_s3 = inlined_call_operand.hbm [shape: f32[512,128], index: 3, kind: input, shape index: {}]   ;;  %s3389_s4 = inlined_call_operand.hbm [shape: f32[1,256], index: 4, kind: output, shape index: {}]  }
   0x1   :  { %10 = vsyncpa [#allocation4], 0 }
   0x2   :  { %12 = vsyncpa [#allocation4 + $0x1], 0  ;;  %s2670_s15 = smov 0   ;;  %s2672_s16 = smov 0  }
   0x3   :  { %s2674_s17 = smov 0   ;;  %s2676_s18 = smov 0  }
   0x4 LB: > { %s2691_s19 = sadd.s32 4294967295, %s2637_s18   ;;  %s1822_s20 = sadd.s32 4294967294, %s2637_s18   ;;  %s2637_s18 = sphi %s2676_s18, %s3397_s18   ;;  %s2633_s17 = sphi %s2674_s17, %s3396_s17   ;;  %s2629_s16 = sphi %s2672_s16, %s3395_s16   ;;  %s2625_s15 = sphi %s2670_s15, %s3394_s15  }
   0x5   : > { %s2695_s21 = sadd.s32 1, %s2637_s18   ;;  %s119_s22 = sadd.s32 1, %s2633_s17 }
   0x6   : > { %s116_s23 = ssub.s32 %s2637_s18, %s2695_s21  ;;  %p129_p0 = scmp.ne.s32.totalorder %s2633_s17, %s2629_s16 }
   0x7   : > { %p117_p1 = scmp.eq.s32.totalorder %s116_s23, 0  ;;  %p130_p2 = scmp.eq.s32.totalorder %s2691_s19, 1 }
   0x8   : > { %p135_p3 = scmp.ne.s32.totalorder %s2629_s16, %s2625_s15  ;;  %p136_p4 = scmp.eq.s32.totalorder %s1822_s20, 1 }
   0x9   : > { %s2706_s24 = scalar_select %p117_p1, %s2633_s17, %s119_s22  }
   0xa   : > { %p2708_p5 = por %p130_p2, %p129_p0  ;;  %p2712_p6 = por %p136_p4, %p135_p3 }
   0xb   : > { %p1823_p7 = scmp.ge.s32.totalorder %s2637_s18, 1  ;;  %p143_p8 = scmp.lt.s32.totalorder %s2637_s18, 3 }
   0xc   : > { %s3391_s26 = scalar_select %p2712_p6, 1, 0 }
   0xd   : > { %p2441_p9 = scmp.eq.s32.totalorder %s2691_s19, 0  ;;  %p2719_p10 = pnand %p1823_p7, %p143_p8 }
   0xe   : > { %s2639_s28 = smov [#allocation2]  }
   0xf   : > { %s158_s29 = sshll.u32 %s2639_s28, 4  ;;  %p2433_p11 = pneg %p2719_p10  ;;  %s159_s29 = int_to_ptr.vmem [resolvable:$true] %s158_s29 }
  0x10   : > { %s2558_s30 = scalar_lea.vmem %s159_s29, 8192  ;;  %p2566_p3 = scmp.lt.s32.totalorder %s159_s29, %s159_s29 }
  0x11   : > { %p2434_p12 = pnand %p2441_p9, %p2433_p11  ;;  %p2559_p0 = scmp.ne.s32.totalorder %s159_s29, %s2558_s30 }
  0x12   : > { %p2567_p4 = scmp.lt.s32.totalorder %s2558_s30, %s2558_s30 }
  0x13   : > { %p2549_p13 = pneg %p2434_p12 }
  0x14   : > { %p2568_p6 = por %p2567_p4, %p2566_p3 }
  0x15   : > { %p2561_p1 = pnand %p2559_p0, %p2549_p13 }
  0x17   : > { %p2562_p2 = pneg %p2561_p1 }
  0x19   : > { %p2569_p7 = pnand %p2568_p6, %p2562_p2 }
  0x1b   : > { %2572 = shalt.err (!%p2569_p7)
}
  0x1c   : > { %s2640_s5 = smov 128   ;;  %s2641_s6 = smov 8  }
  0x1d   : > { %2436 = dma.hbm_to_vmem [thread:$0]  (!%p2434_p12), %s3388_s3, 8192, %s159_s29, [#allocation3], %s2640_s5, %s2640_s5, %s2641_s6  }
  0x1e   : > { %192 = sbr.rel (%p2719_p10) target bundleno = 681 (0x2a9), region = 36 }
  0x23   : > { %2616 = dma.done.wait (%p2441_p9), [#allocation3], 8192  }
  0x24   : > { %2618 = vsyncadd (%p2441_p9), [#allocation3], 4294959104  ;;  %s2737_s9 = sshll.u32 %s2691_s19, 4  ;;  %v2642_v0 = vmov 0   ;;  %v782_v9 = vld [vmem:[%s3387_s2 + $0xf8] sm:$0xff]  ;;  %v781_v13 = vld [vmem:[%s3387_s2 + $0xf0] sm:$0xff] }
  0x25   : > { %2482 = vset.pattern.permute.xlu1 %v2642_v0  ;;  %2481 = vset.pattern.permute.xlu0 %v2642_v0  ;;  %p223_p6 = scmp.lt.s32.totalorder %s2737_s9, 31  ;;  %v814_v10 = vld [vmem:[%s3387_s2 + $0x1f8] sm:$0xff]  ;;  %v813_v14 = vld [vmem:[%s3387_s2 + $0x1f0] sm:$0xff]  ;;  %v780_v17 = vld [vmem:[%s3387_s2 + $0xe8] sm:$0xff]  ;;  %s3348_s12 = scalar_lea.hbm %s3389_s4, %s2737_s9 }
  0x26   : > { %2107 = vmatprep.subr.mxu0 %v782_v9  ;;  %v766_v11 = vld [vmem:[%s3387_s2 + $0x78] sm:$0xff]  ;;  %2187 = vmatprep.subr.mxu1 %v814_v10  ;;  %v765_v15 = vld [vmem:[%s3387_s2 + $0x70] sm:$0xff]  ;;  %v812_v20 = vld [vmem:[%s3387_s2 + $0x1e8] sm:$0xff]  ;;  %s2644_s22 = smov [#allocation5]  }
  0x27   : > { %s2741_s10 = scalar_select %p223_p6, %s2737_s9, 31  ;;  %v798_v12 = vld [vmem:[%s3387_s2 + $0x178] sm:$0xff]  ;;  %2108 = vmatpush3.msra.mxu0 %v766_v11  ;;  %v797_v16 = vld [vmem:[%s3387_s2 + $0x170] sm:$0xff]  ;;  %v764_v21 = vld [vmem:[%s3387_s2 + $0x68] sm:$0xff] }
  0x28   : > { %2188 = vmatpush3.msra.mxu1 %v798_v12  ;;  %2109 = vmatprep.subr.mxu0 %v781_v13  ;;  %v796_v22 = vld [vmem:[%s3387_s2 + $0x168] sm:$0xff]  ;;  %v779_v23 = vld [vmem:[%s3387_s2 + $0xe0] sm:$0xff]  ;;  %v778_v29 = vld [vmem:[%s3387_s2 + $0xd8] sm:$0xff]  ;;  %s2577_s23 = sshll.u32 %s2644_s22, 4  ;;  %s2578_s23 = int_to_ptr.vmem [resolvable:$false] %s2577_s23 }
  0x29   : > { %s1829_s11 = sshll.u32 %s2741_s10, 3  ;;  %2189 = vmatprep.subr.mxu1 %v813_v14  ;;  %2110 = vmatpush3.msra.mxu0 %v765_v15  ;;  %v811_v24 = vld [vmem:[%s3387_s2 + $0x1e0] sm:$0xff]  ;;  %v810_v30 = vld [vmem:[%s3387_s2 + $0x1d8] sm:$0xff]  ;;  %v777_v33 = vld [vmem:[%s3387_s2 + $0xd0] sm:$0xff]  ;;  %s2579_s27 = scalar_lea.vmem %s2578_s23, 32 }
  0x2a   : > { %s2749_s14 = scalar_lea.vmem %s3385_s0, %s1829_s11  ;;  %2190 = vmatpush3.msra.mxu1 %v797_v16  ;;  %2111 = vmatprep.subr.mxu0 %v780_v17  ;;  %v763_v25 = vld [vmem:[%s3387_s2 + $0x60] sm:$0xff]  ;;  %v762_v31 = vld [vmem:[%s3387_s2 + $0x58] sm:$0xff]  ;;  %v809_v36 = vld [vmem:[%s3387_s2 + $0x1d0] sm:$0xff]  ;;  %s2853_s19 = scalar_lea.vmem %s3386_s1, %s1829_s11 }
  0x2b   : > { %v241_v1 = vld [vmem:[%s2749_s14 + $0x10] sm:$0xff]  ;;  %v239_v2 = vld [vmem:[%s2749_s14] sm:$0xff]  ;;  %v242_v3 = vld [vmem:[%s2749_s14 + $0x18] sm:$0xff]  ;;  %2191 = vmatprep.subr.mxu1 %v812_v20  ;;  %2112 = vmatpush3.msra.mxu0 %v764_v21 }
  0x2c   : > { %262 = vperm.xlu1 %2482, %v241_v1   ;;  %256 = vperm.xlu0 %2481, %v239_v2   ;;  %v240_v4 = vld [vmem:[%s2749_s14 + $0x8] sm:$0xff]  ;;  %v243_v6 = vld [vmem:[%s2749_s14 + $0x20] sm:$0xff]  ;;  %v246_v7 = vld [vmem:[%s2749_s14 + $0x38] sm:$0xff] }
  0x2d   : > { %v244_v5 = vld [vmem:[%s2749_s14 + $0x28] sm:$0xff]  ;;  %v245_v8 = vld [vmem:[%s2749_s14 + $0x30] sm:$0xff]  ;;  %v247_v19 = vld [vmem:[%s2749_s14 + $0x40] sm:$0xff]  ;;  %2192 = vmatpush3.msra.mxu1 %v796_v22  ;;  %2113 = vmatprep.subr.mxu0 %v779_v23 }
  0x2e   : > { %v248_v18 = vld [vmem:[%s2749_s14 + $0x48] sm:$0xff]  ;;  %v250_v26 = vld [vmem:[%s2749_s14 + $0x58] sm:$0xff]  ;;  %v249_v27 = vld [vmem:[%s2749_s14 + $0x50] sm:$0xff]  ;;  %2193 = vmatprep.subr.mxu1 %v811_v24  ;;  %2114 = vmatpush3.msra.mxu0 %v763_v25 }
  0x2f   : > { %v795_v28 = vld [vmem:[%s3387_s2 + $0x160] sm:$0xff]  ;;  %v794_v32 = vld [vmem:[%s3387_s2 + $0x158] sm:$0xff]  ;;  %v252_v34 = vld [vmem:[%s2749_s14 + $0x68] sm:$0xff]  ;;  %2115 = vmatprep.subr.mxu0 %v778_v29 }
  0x30   : > { %265 = vperm.xlu1 %2482, %v242_v3   ;;  %259 = vperm.xlu0 %2481, %v240_v4   ;;  %v251_v35 = vld [vmem:[%s2749_s14 + $0x60] sm:$0xff]  ;;  %v761_v37 = vld [vmem:[%s3387_s2 + $0x50] sm:$0xff]  ;;  %v776_v39 = vld [vmem:[%s3387_s2 + $0xc8] sm:$0xff] }
  0x31   : > { %2194 = vmatpush3.msra.mxu1 %v795_v28  ;;  %2116 = vmatpush3.msra.mxu0 %v762_v31  ;;  %v793_v38 = vld [vmem:[%s3387_s2 + $0x150] sm:$0xff]  ;;  %v808_v40 = vld [vmem:[%s3387_s2 + $0x1c8] sm:$0xff]  ;;  %v254_v42 = vld [vmem:[%s2749_s14 + $0x78] sm:$0xff] }
  0x32   : > { %2195 = vmatprep.subr.mxu1 %v810_v30  ;;  %2117 = vmatprep.subr.mxu0 %v777_v33  ;;  %v760_v41 = vld [vmem:[%s3387_s2 + $0x48] sm:$0xff]  ;;  %v253_v43 = vld [vmem:[%s2749_s14 + $0x70] sm:$0xff]  ;;  %v775_v45 = vld [vmem:[%s3387_s2 + $0xc0] sm:$0xff] }
  0x33   : > { %2196 = vmatpush3.msra.mxu1 %v794_v32  ;;  %2118 = vmatpush3.msra.mxu0 %v761_v37  ;;  %v792_v44 = vld [vmem:[%s3387_s2 + $0x148] sm:$0xff]  ;;  %v807_v46 = vld [vmem:[%s3387_s2 + $0x1c0] sm:$0xff]  ;;  %v774_v49 = vld [vmem:[%s3387_s2 + $0xb8] sm:$0xff] }
  0x34   : > { %271 = vperm.xlu1 %2482, %v244_v5   ;;  %268 = vperm.xlu0 %2481, %v243_v6   ;;  %v759_v47 = vld [vmem:[%s3387_s2 + $0x40] sm:$0xff]  ;;  %v496_v50 = vld [vmem:[%s2853_s19 + $0x8] sm:$0xff]  ;;  %v806_v52 = vld [vmem:[%s3387_s2 + $0x1b8] sm:$0xff] }
  0x35   : > { %2197 = vmatprep.subr.mxu1 %v809_v36  ;;  %2119 = vmatprep.subr.mxu0 %v776_v39  ;;  %v791_v48 = vld [vmem:[%s3387_s2 + $0x140] sm:$0xff]  ;;  %v758_v53 = vld [vmem:[%s3387_s2 + $0x38] sm:$0xff]  ;;  %v773_v55 = vld [vmem:[%s3387_s2 + $0xb0] sm:$0xff] }
  0x36   : > { %2198 = vmatpush3.msra.mxu1 %v793_v38  ;;  %2120 = vmatpush3.msra.mxu0 %v760_v41  ;;  %v495_v51 = vld [vmem:[%s2853_s19] sm:$0xff]  ;;  %v790_v54 = vld [vmem:[%s3387_s2 + $0x138] sm:$0xff]  ;;  %v805_v56 = vld [vmem:[%s3387_s2 + $0x1b0] sm:$0xff] }
  0x37   : > { %2199 = vmatprep.subr.mxu1 %v808_v40  ;;  %2121 = vmatprep.subr.mxu0 %v775_v45  ;;  %v757_v57 = vld [vmem:[%s3387_s2 + $0x30] sm:$0xff]  ;;  %v498_v58 = vld [vmem:[%s2853_s19 + $0x18] sm:$0xff]  ;;  %v772_v61 = vld [vmem:[%s3387_s2 + $0xa8] sm:$0xff] }
  0x38   : > { %277 = vperm.xlu1 %2482, %v246_v7   ;;  %274 = vperm.xlu0 %2481, %v245_v8   ;;  %v497_v59 = vld [vmem:[%s2853_s19 + $0x10] sm:$0xff]  ;;  %v804_v62 = vld [vmem:[%s3387_s2 + $0x1a8] sm:$0xff]  ;;  %v771_v1 = vld [vmem:[%s3387_s2 + $0xa0] sm:$0xff] }
  0x39   : > { %2200 = vmatpush3.msra.mxu1 %v792_v44  ;;  %2122 = vmatpush3.msra.mxu0 %v759_v47  ;;  %v789_v60 = vld [vmem:[%s3387_s2 + $0x130] sm:$0xff]  ;;  %v756_v63 = vld [vmem:[%s3387_s2 + $0x28] sm:$0xff]  ;;  %v499_v3 = vld [vmem:[%s2853_s19 + $0x20] sm:$0xff] }
  0x3a   : > { %2201 = vmatprep.subr.mxu1 %v807_v46  ;;  %2123 = vmatprep.subr.mxu0 %v774_v49  ;;  %v788_v0 = vld [vmem:[%s3387_s2 + $0x128] sm:$0xff]  ;;  %v803_v4 = vld [vmem:[%s3387_s2 + $0x1a0] sm:$0xff]  ;;  %v770_v7 = vld [vmem:[%s3387_s2 + $0x98] sm:$0xff] }
  0x3b   : > { %2202 = vmatpush3.msra.mxu1 %v791_v48  ;;  %2124 = vmatpush3.msra.mxu0 %v758_v53  ;;  %v500_v2 = vld [vmem:[%s2853_s19 + $0x28] sm:$0xff]  ;;  %v755_v5 = vld [vmem:[%s3387_s2 + $0x20] sm:$0xff]  ;;  %v802_v8 = vld [vmem:[%s3387_s2 + $0x198] sm:$0xff] }
  0x3c   : > { %283 = vperm.xlu1 %2482, %v248_v18   ;;  %280 = vperm.xlu0 %2481, %v247_v19   ;;  %v787_v6 = vld [vmem:[%s3387_s2 + $0x120] sm:$0xff]  ;;  %v754_v9 = vld [vmem:[%s3387_s2 + $0x18] sm:$0xff]  ;;  %v501_v11 = vld [vmem:[%s2853_s19 + $0x30] sm:$0xff] }
  0x3d   : > { %2203 = vmatprep.subr.mxu1 %v806_v52  ;;  %2125 = vmatprep.subr.mxu0 %v773_v55  ;;  %v502_v10 = vld [vmem:[%s2853_s19 + $0x38] sm:$0xff]  ;;  %v769_v13 = vld [vmem:[%s3387_s2 + $0x90] sm:$0xff]  ;;  %v768_v17 = vld [vmem:[%s3387_s2 + $0x88] sm:$0xff] }
  0x3e   : > { %2204 = vmatpush3.msra.mxu1 %v790_v54  ;;  %2126 = vmatpush3.msra.mxu0 %v757_v57  ;;  %v786_v12 = vld [vmem:[%s3387_s2 + $0x118] sm:$0xff]  ;;  %v801_v14 = vld [vmem:[%s3387_s2 + $0x190] sm:$0xff]  ;;  %v504_v18 = vld [vmem:[%s2853_s19 + $0x48] sm:$0xff] }
  0x3f   : > { %2205 = vmatprep.subr.mxu1 %v805_v56  ;;  %2127 = vmatprep.subr.mxu0 %v772_v61  ;;  %v753_v15 = vld [vmem:[%s3387_s2 + $0x10] sm:$0xff]  ;;  %v503_v19 = vld [vmem:[%s2853_s19 + $0x40] sm:$0xff]  ;;  %v800_v20 = vld [vmem:[%s3387_s2 + $0x188] sm:$0xff] }
  0x40   : > { %289 = vperm.xlu1 %2482, %v250_v26   ;;  %286 = vperm.xlu0 %2481, %v249_v27   ;;  %v785_v16 = vld [vmem:[%s3387_s2 + $0x110] sm:$0xff]  ;;  %v752_v21 = vld [vmem:[%s3387_s2 + $0x8] sm:$0xff]  ;;  %v767_v23 = vld [vmem:[%s3387_s2 + $0x80] sm:$0xff] }
  0x41   : > { %2206 = vmatpush3.msra.mxu1 %v789_v60  ;;  %2128 = vmatpush3.msra.mxu0 %v756_v63  ;;  %v784_v22 = vld [vmem:[%s3387_s2 + $0x108] sm:$0xff]  ;;  %v799_v24 = vld [vmem:[%s3387_s2 + $0x180] sm:$0xff]  ;;  %v506_v26 = vld [vmem:[%s2853_s19 + $0x58] sm:$0xff] }
  0x42   : > { %2207 = vmatprep.subr.mxu1 %v804_v62  ;;  %2129 = vmatprep.subr.mxu0 %v771_v1  ;;  %v751_v25 = vld [vmem:[%s3387_s2] sm:$0xff]  ;;  %v505_v27 = vld [vmem:[%s2853_s19 + $0x50] sm:$0xff]  ;;  %v1136_v29 = vld [vmem:[#allocation2 + $0xf8] sm:$0xff] }
  0x43   : > { %2208 = vmatpush3.msra.mxu1 %v788_v0  ;;  %2130 = vmatpush3.msra.mxu0 %v755_v5  ;;  %v783_v28 = vld [vmem:[%s3387_s2 + $0x100] sm:$0xff]  ;;  %v1168_v30 = vld [vmem:[#allocation2 + $0x1f8] sm:$0xff]  ;;  %v508_v31 = vld [vmem:[%s2853_s19 + $0x68] sm:$0xff] }
  0x44   : > { %295 = vperm.xlu1 %2482, %v252_v34   ;;  %292 = vperm.xlu0 %2481, %v251_v35   ;;  %v507_v32 = vld [vmem:[%s2853_s19 + $0x60] sm:$0xff]  ;;  %v510_v33 = vld [vmem:[%s2853_s19 + $0x78] sm:$0xff]  ;;  %v509_v34 = vld [vmem:[%s2853_s19 + $0x70] sm:$0xff]  ;;  %v234_v35 = vlaneseq  ;;  %s220_s19 = sand.u32 1, %s2629_s16  }
  0x45   : > { %2209 = vmatprep.subr.mxu1 %v803_v4  ;;  %2131 = vmatprep.subr.mxu0 %v770_v7  ;;  %v1120_v41 = vld [vmem:[#allocation2 + $0x78] sm:$0xff]  ;;  %v1135_v44 = vld [vmem:[#allocation2 + $0xf0] sm:$0xff]  ;;  %v1118_v52 = vld [vmem:[#allocation2 + $0x68] sm:$0xff]  ;;  %s221_s5 = scalar_lea.vmem [#allocation5], %s220_s19  ;;  %s1731_s13 = scalar_lea.sflag [#allocation4], %s220_s19 }
  0x46   : > { %2210 = vmatpush3.msra.mxu1 %v787_v6  ;;  %2132 = vmatpush3.msra.mxu0 %v754_v9  ;;  %v2983_v36 = vand.u32 127, %v234_v35  ;;  %v1167_v45 = vld [vmem:[#allocation2 + $0x1f0] sm:$0xff]  ;;  %v1150_v53 = vld [vmem:[#allocation2 + $0x168] sm:$0xff]  ;;  %v1133_v55 = vld [vmem:[#allocation2 + $0xe0] sm:$0xff]  ;;  %s1743_s6 = sshll.u32 %s221_s5, 4  ;;  %s1744_s6 = int_to_ptr.vmem [resolvable:$true] %s1743_s6 }
  0x47   : > { %2211 = vmatprep.subr.mxu1 %v802_v8  ;;  %2133 = vmatprep.subr.mxu0 %v769_v13  ;;  %v1119_v48 = vld [vmem:[#allocation2 + $0x70] sm:$0xff]  ;;  %v1165_v56 = vld [vmem:[#allocation2 + $0x1e0] sm:$0xff]  ;;  %v1132_v60 = vld [vmem:[#allocation2 + $0xd8] sm:$0xff]  ;;  %s2573_s20 = scalar_lea.vmem %s1744_s6, 16  ;;  %p2580_p11 = scmp.lt.s32.totalorder %s1744_s6, %s2578_s23 }
  0x48   : > { %301 = vperm.xlu1 %2482, %v254_v42   ;;  %298 = vperm.xlu0 %2481, %v253_v43   ;;  %v2986_v37 = vadd.s32 128, %v2983_v36  ;;  %v2989_v38 = vadd.s32 384, %v2983_v36  ;;  %v2992_v39 = vadd.s32 256, %v2983_v36  ;;  %v1152_v42 = vld [vmem:[#allocation2 + $0x178] sm:$0xff]  ;;  %v2643_v43 = vmov 1.0   ;;  %v1151_v49 = vld [vmem:[#allocation2 + $0x170] sm:$0xff]  ;;  %p2574_p8 = scmp.ne.s32.totalorder %s1744_s6, %s2573_s20  ;;  %p2581_p12 = scmp.lt.s32.totalorder %s2579_s27, %s2573_s20 }
  0x49   : > { %2212 = vmatpush3.msra.mxu1 %v786_v12  ;;  %2134 = vmatpush3.msra.mxu0 %v753_v15  ;;  %v1164_v61 = vld [vmem:[#allocation2 + $0x1d8] sm:$0xff]  ;;  %v1131_v1 = vld [vmem:[#allocation2 + $0xd0] sm:$0xff]  ;;  %v1130_v6 = vld [vmem:[#allocation2 + $0xc8] sm:$0xff] }
  0x4a   : > { %2213 = vmatprep.subr.mxu1 %v801_v14  ;;  %2135 = vmatprep.subr.mxu0 %v768_v17  ;;  %v1116_v63 = vld [vmem:[#allocation2 + $0x58] sm:$0xff]  ;;  %v1115_v4 = vld [vmem:[#allocation2 + $0x50] sm:$0xff]  ;;  %v1162_v7 = vld [vmem:[#allocation2 + $0x1c8] sm:$0xff]  ;;  %p2575_p9 = pnand %p2574_p8, %p2708_p5  ;;  %p2582_p13 = por %p2581_p12, %p2580_p11 }
  0x4b   : > { %2214 = vmatpush3.msra.mxu1 %v785_v16  ;;  %2136 = vmatpush3.msra.mxu0 %v752_v21  ;;  %v1148_v0 = vld [vmem:[#allocation2 + $0x158] sm:$0xff]  ;;  %v1147_v5 = vld [vmem:[#allocation2 + $0x150] sm:$0xff]  ;;  %v1114_v9 = vld [vmem:[#allocation2 + $0x48] sm:$0xff] }
  0x4c   : > { %515 = vperm.xlu1 %2482, %v496_v50   ;;  %512 = vperm.xlu0 %2481, %v495_v51   ;;  %v1134_v50 = vld [vmem:[#allocation2 + $0xe8] sm:$0xff]  ;;  %v1161_v12 = vld [vmem:[#allocation2 + $0x1c0] sm:$0xff]  ;;  %v1128_v16 = vld [vmem:[#allocation2 + $0xb8] sm:$0xff]  ;;  %p2576_p10 = pneg %p2575_p9 }
  0x4d   : > { %2215 = vmatprep.subr.mxu1 %v800_v20  ;;  %2137 = vmatprep.subr.mxu0 %v767_v23  ;;  %v1166_v51 = vld [vmem:[#allocation2 + $0x1e8] sm:$0xff]  ;;  %v1113_v14 = vld [vmem:[#allocation2 + $0x40] sm:$0xff]  ;;  %v1160_v17 = vld [vmem:[#allocation2 + $0x1b8] sm:$0xff] }
  0x4e   : > { %2216 = vmatpush3.msra.mxu1 %v784_v22  ;;  %2138 = vmatpush3.msra.mxu0 %v751_v25  ;;  %v1145_v15 = vld [vmem:[#allocation2 + $0x140] sm:$0xff]  ;;  %v1144_v20 = vld [vmem:[#allocation2 + $0x138] sm:$0xff]  ;;  %v1127_v21 = vld [vmem:[#allocation2 + $0xb0] sm:$0xff]  ;;  %p2583_p0 = pnand %p2582_p13, %p2576_p10 }
  0x4f   : > { %2217 = vmatprep.subr.mxu1 %v799_v24  ;;  %2267 = vmatprep.subr.mxu0 %v1136_v29  ;;  %v1159_v22 = vld [vmem:[#allocation2 + $0x1b0] sm:$0xff]  ;;  %v1110_v29 = vld [vmem:[#allocation2 + $0x28] sm:$0xff] }
  0x50   : > { %521 = vperm.xlu1 %2482, %v498_v58   ;;  %518 = vperm.xlu0 %2481, %v497_v59   ;;  %v1117_v58 = vld [vmem:[#allocation2 + $0x60] sm:$0xff]  ;;  %v1111_v24 = vld [vmem:[#allocation2 + $0x30] sm:$0xff] }
  0x51   : > { %2218 = vmatpush3.msra.mxu1 %v783_v28  ;;  %v1149_v59 = vld [vmem:[#allocation2 + $0x160] sm:$0xff]  ;;  %v1143_v25 = vld [vmem:[#allocation2 + $0x130] sm:$0xff] }
  0x52   : > { %2347 = vmatprep.subr.mxu1 %v1168_v30  ;;  %v1142_v30 = vld [vmem:[#allocation2 + $0x128] sm:$0xff] }
  0x54   : > { %527 = vperm.xlu1 %2482, %v500_v2   ;;  %524 = vperm.xlu0 %2481, %v499_v3   ;;  %v1163_v2 = vld [vmem:[#allocation2 + $0x1d0] sm:$0xff] }
  0x58   : > { %533 = vperm.xlu1 %2482, %v502_v10   ;;  %530 = vperm.xlu0 %2481, %v501_v11   ;;  %v1146_v10 = vld [vmem:[#allocation2 + $0x148] sm:$0xff]  ;;  %v1129_v11 = vld [vmem:[#allocation2 + $0xc0] sm:$0xff] }
  0x5c   : > { %539 = vperm.xlu1 %2482, %v504_v18   ;;  %536 = vperm.xlu0 %2481, %v503_v19   ;;  %v1112_v19 = vld [vmem:[#allocation2 + $0x38] sm:$0xff] }
  0x60   : > { %545 = vperm.xlu1 %2482, %v506_v26   ;;  %542 = vperm.xlu0 %2481, %v505_v27   ;;  %v1126_v26 = vld [vmem:[#allocation2 + $0xa8] sm:$0xff] }
  0x61   : > { %v1158_v27 = vld [vmem:[#allocation2 + $0x1a8] sm:$0xff] }
  0x64   : > { %551 = vperm.xlu1 %2482, %v508_v31   ;;  %548 = vperm.xlu0 %2481, %v507_v32   ;;  %v1125_v31 = vld [vmem:[#allocation2 + $0xa0] sm:$0xff] }
  0x65   : > { %v1157_v32 = vld [vmem:[#allocation2 + $0x1a0] sm:$0xff] }
  0x68   : > { %557 = vperm.xlu1 %2482, %v510_v33   ;;  %554 = vperm.xlu0 %2481, %v509_v34   ;;  %v1109_v34 = vld [vmem:[#allocation2 + $0x20] sm:$0xff] }
  0xa7   : > { %v257_v40 = vpop.permute.xlu0 %256  ;;  %v263_v47 = vpop.permute.xlu1 %262 }
  0xa8   : > { %vm304_vm0 = vcmp.eq.s32.totalorder %v2986_v37, %v257_v40  ;;  %vm306_vm1 = vcmp.eq.s32.totalorder %v2989_v38, %v257_v40  ;;  %vm303_vm2 = vcmp.eq.s32.totalorder %v2983_v36, %v257_v40  ;;  %vm305_vm3 = vcmp.eq.s32.totalorder %v2992_v39, %v257_v40  ;;  %v1141_v40 = vld [vmem:[#allocation2 + $0x120] sm:$0xff] }
  0xa9   : > { %1960 = vmatprep.mubr.msk.f32.mxu0 %vm304_vm0, %v2643_v43  ;;  %1992 = vmatprep.mubr.msk.f32.mxu1 %vm306_vm1, %v2643_v43  ;;  %vm312_vm8 = vcmp.eq.s32.totalorder %v2986_v37, %v263_v47  ;;  %vm314_vm9 = vcmp.eq.s32.totalorder %v2989_v38, %v263_v47  ;;  %vm311_vm10 = vcmp.eq.s32.totalorder %v2983_v36, %v263_v47 }
  0xaa   : > { %1961 = vmatmul.mubr.msk.f32.vlgmr.msra.gmra.mxu0 %vm303_vm2, %v2643_v43  ;;  %1993 = vmatmul.mubr.msk.f32.vlgmr.msra.gmra.mxu1 %vm305_vm3, %v2643_v43  ;;  %vm313_vm11 = vcmp.eq.s32.totalorder %v2992_v39, %v263_v47  ;;  %v1123_v47 = vld [vmem:[#allocation2 + $0x90] sm:$0xff] }
  0xab   : > { %2268 = vmatpush3.msra.mxu0 %v1120_v41  ;;  %2348 = vmatpush3.msra.mxu1 %v1152_v42  ;;  %v260_v46 = vpop.permute.xlu0 %259  ;;  %v266_v54 = vpop.permute.xlu1 %265  ;;  %v1124_v41 = vld [vmem:[#allocation2 + $0x98] sm:$0xff] }
  0xac   : > { %vm308_vm4 = vcmp.eq.s32.totalorder %v2986_v37, %v260_v46  ;;  %vm310_vm5 = vcmp.eq.s32.totalorder %v2989_v38, %v260_v46  ;;  %2269 = vmatprep.subr.mxu0 %v1135_v44  ;;  %2349 = vmatprep.subr.mxu1 %v1167_v45  ;;  %vm307_vm6 = vcmp.eq.s32.totalorder %v2983_v36, %v260_v46  ;;  %v1156_v42 = vld [vmem:[#allocation2 + $0x198] sm:$0xff] }
  0xad   : > { %1962 = vmatprep.mubr.msk.f32.mxu0 %vm308_vm4, %v2643_v43  ;;  %1994 = vmatprep.mubr.msk.f32.mxu1 %vm310_vm5, %v2643_v43  ;;  %vm309_vm7 = vcmp.eq.s32.totalorder %v2992_v39, %v260_v46  ;;  %vm316_vm12 = vcmp.eq.s32.totalorder %v2986_v37, %v266_v54  ;;  %vm318_vm13 = vcmp.eq.s32.totalorder %v2989_v38, %v266_v54  ;;  %v1108_v45 = vld [vmem:[#allocation2 + $0x18] sm:$0xff] }
  0xae   : > { %1963 = vmatmul.mubr.msk.f32.gmra.mxu0 %vm307_vm6, %v2643_v43  ;;  %1995 = vmatmul.mubr.msk.f32.gmra.mxu1 %vm309_vm7, %v2643_v43  ;;  %vm315_vm14 = vcmp.eq.s32.totalorder %v2983_v36, %v266_v54  ;;  %vm317_vm15 = vcmp.eq.s32.totalorder %v2992_v39, %v266_v54  ;;  %v1140_v46 = vld [vmem:[#allocation2 + $0x118] sm:$0xff] }
  0xaf   : > { %2270 = vmatpush3.msra.mxu0 %v1119_v48  ;;  %2350 = vmatpush3.msra.mxu1 %v1151_v49  ;;  %v269_v57 = vpop.permute.xlu0 %268  ;;  %v272_v62 = vpop.permute.xlu1 %271  ;;  %v1155_v48 = vld [vmem:[#allocation2 + $0x190] sm:$0xff] }
  0xb0   : > { %1964 = vmatprep.mubr.msk.f32.mxu0 %vm312_vm8, %v2643_v43  ;;  %1996 = vmatprep.mubr.msk.f32.mxu1 %vm314_vm9, %v2643_v43  ;;  %vm320_vm0 = vcmp.eq.s32.totalorder %v2986_v37, %v269_v57  ;;  %vm322_vm1 = vcmp.eq.s32.totalorder %v2989_v38, %v269_v57  ;;  %vm319_vm2 = vcmp.eq.s32.totalorder %v2983_v36, %v269_v57 }
  0xb1   : > { %2271 = vmatprep.subr.mxu0 %v1134_v50  ;;  %2351 = vmatprep.subr.mxu1 %v1166_v51  ;;  %vm321_vm3 = vcmp.eq.s32.totalorder %v2992_v39, %v269_v57  ;;  %vm324_vm4 = vcmp.eq.s32.totalorder %v2986_v37, %v272_v62  ;;  %vm326_vm5 = vcmp.eq.s32.totalorder %v2989_v38, %v272_v62  ;;  %v1107_v50 = vld [vmem:[#allocation2 + $0x10] sm:$0xff]  ;;  %v1121_v57 = vld [vmem:[#allocation2 + $0x80] sm:$0xff] }
  0xb2   : > { %1965 = vmatmul.mubr.msk.f32.gmra.mxu0 %vm311_vm10, %v2643_v43  ;;  %1997 = vmatmul.mubr.msk.f32.gmra.mxu1 %vm313_vm11, %v2643_v43  ;;  %vm323_vm6 = vcmp.eq.s32.totalorder %v2983_v36, %v272_v62  ;;  %vm325_vm7 = vcmp.eq.s32.totalorder %v2992_v39, %v272_v62  ;;  %v1139_v51 = vld [vmem:[#allocation2 + $0x110] sm:$0xff] }
  0xb3   : > { %2272 = vmatpush3.msra.mxu0 %v1118_v52  ;;  %2352 = vmatpush3.msra.mxu1 %v1150_v53  ;;  %v275_v3 = vpop.permute.xlu0 %274  ;;  %v278_v8 = vpop.permute.xlu1 %277  ;;  %v1122_v52 = vld [vmem:[#allocation2 + $0x88] sm:$0xff] }
  0xb4   : > { %1966 = vmatprep.mubr.msk.f32.mxu0 %vm316_vm12, %v2643_v43  ;;  %1998 = vmatprep.mubr.msk.f32.mxu1 %vm318_vm13, %v2643_v43  ;;  %vm328_vm8 = vcmp.eq.s32.totalorder %v2986_v37, %v275_v3  ;;  %vm330_vm9 = vcmp.eq.s32.totalorder %v2989_v38, %v275_v3  ;;  %vm327_vm10 = vcmp.eq.s32.totalorder %v2983_v36, %v275_v3  ;;  %v1154_v53 = vld [vmem:[#allocation2 + $0x188] sm:$0xff] }
  0xb5   : > { %2273 = vmatprep.subr.mxu0 %v1133_v55  ;;  %2353 = vmatprep.subr.mxu1 %v1165_v56  ;;  %vm329_vm11 = vcmp.eq.s32.totalorder %v2992_v39, %v275_v3  ;;  %vm332_vm12 = vcmp.eq.s32.totalorder %v2986_v37, %v278_v8  ;;  %vm334_vm13 = vcmp.eq.s32.totalorder %v2989_v38, %v278_v8  ;;  %v1106_v55 = vld [vmem:[#allocation2 + $0x8] sm:$0xff] }
  0xb6   : > { %1967 = vmatmul.mubr.msk.f32.gmra.mxu0 %vm315_vm14, %v2643_v43  ;;  %1999 = vmatmul.mubr.msk.f32.gmra.mxu1 %vm317_vm15, %v2643_v43  ;;  %vm331_vm14 = vcmp.eq.s32.totalorder %v2983_v36, %v278_v8  ;;  %vm333_vm15 = vcmp.eq.s32.totalorder %v2992_v39, %v278_v8  ;;  %v1138_v56 = vld [vmem:[#allocation2 + $0x108] sm:$0xff] }
  0xb7   : > { %2274 = vmatpush3.msra.mxu0 %v1117_v58  ;;  %2354 = vmatpush3.msra.mxu1 %v1149_v59  ;;  %v281_v13 = vpop.permute.xlu0 %280  ;;  %v284_v18 = vpop.permute.xlu1 %283  ;;  %v1153_v58 = vld [vmem:[#allocation2 + $0x180] sm:$0xff] }
  0xb8   : > { %1968 = vmatprep.mubr.msk.f32.mxu0 %vm320_vm0, %v2643_v43  ;;  %2000 = vmatprep.mubr.msk.f32.mxu1 %vm322_vm1, %v2643_v43  ;;  %vm336_vm0 = vcmp.eq.s32.totalorder %v2986_v37, %v281_v13  ;;  %vm338_vm1 = vcmp.eq.s32.totalorder %v2989_v38, %v281_v13 }
  0xb9   : > { %2275 = vmatprep.subr.mxu0 %v1132_v60  ;;  %2355 = vmatprep.subr.mxu1 %v1164_v61  ;;  %v1105_v60 = vld [vmem:[#allocation2] sm:$0xff] }
  0xba   : > { %1969 = vmatmul.mubr.msk.f32.gmra.mxu0 %vm319_vm2, %v2643_v43  ;;  %2001 = vmatmul.mubr.msk.f32.gmra.mxu1 %vm321_vm3, %v2643_v43  ;;  %vm335_vm2 = vcmp.eq.s32.totalorder %v2983_v36, %v281_v13  ;;  %vm337_vm3 = vcmp.eq.s32.totalorder %v2992_v39, %v281_v13  ;;  %v1137_v61 = vld [vmem:[#allocation2 + $0x100] sm:$0xff] }
  0xbb   : > { %2276 = vmatpush3.msra.mxu0 %v1116_v63  ;;  %2356 = vmatpush3.msra.mxu1 %v1148_v0  ;;  %v287_v23 = vpop.permute.xlu0 %286  ;;  %v290_v28 = vpop.permute.xlu1 %289 }
  0xbc   : > { %1970 = vmatprep.mubr.msk.f32.mxu0 %vm324_vm4, %v2643_v43  ;;  %2002 = vmatprep.mubr.msk.f32.mxu1 %vm326_vm5, %v2643_v43  ;;  %vm340_vm4 = vcmp.eq.s32.totalorder %v2986_v37, %v284_v18  ;;  %vm342_vm5 = vcmp.eq.s32.totalorder %v2989_v38, %v284_v18 }
  0xbd   : > { %2277 = vmatprep.subr.mxu0 %v1131_v1  ;;  %2357 = vmatprep.subr.mxu1 %v1163_v2 }
  0xbe   : > { %1971 = vmatmul.mubr.msk.f32.gmra.mxu0 %vm323_vm6, %v2643_v43  ;;  %2003 = vmatmul.mubr.msk.f32.gmra.mxu1 %vm325_vm7, %v2643_v43  ;;  %vm339_vm6 = vcmp.eq.s32.totalorder %v2983_v36, %v284_v18  ;;  %vm341_vm7 = vcmp.eq.s32.totalorder %v2992_v39, %v284_v18 }
  0xbf   : > { %2278 = vmatpush3.msra.mxu0 %v1115_v4  ;;  %2358 = vmatpush3.msra.mxu1 %v1147_v5  ;;  %v293_v33 = vpop.permute.xlu0 %292  ;;  %v296_v44 = vpop.permute.xlu1 %295 }
  0xc0   : > { %1972 = vmatprep.mubr.msk.f32.mxu0 %vm328_vm8, %v2643_v43  ;;  %2004 = vmatprep.mubr.msk.f32.mxu1 %vm330_vm9, %v2643_v43  ;;  %vm344_vm8 = vcmp.eq.s32.totalorder %v2986_v37, %v287_v23  ;;  %vm346_vm9 = vcmp.eq.s32.totalorder %v2989_v38, %v287_v23 }
  0xc1   : > { %2279 = vmatprep.subr.mxu0 %v1130_v6  ;;  %2359 = vmatprep.subr.mxu1 %v1162_v7 }
  0xc2   : > { %1973 = vmatmul.mubr.msk.f32.gmra.mxu0 %vm327_vm10, %v2643_v43  ;;  %2005 = vmatmul.mubr.msk.f32.gmra.mxu1 %vm329_vm11, %v2643_v43  ;;  %vm343_vm10 = vcmp.eq.s32.totalorder %v2983_v36, %v287_v23  ;;  %vm345_vm11 = vcmp.eq.s32.totalorder %v2992_v39, %v287_v23 }
  0xc3   : > { %2280 = vmatpush3.msra.mxu0 %v1114_v9  ;;  %2360 = vmatpush3.msra.mxu1 %v1146_v10  ;;  %v299_v49 = vpop.permute.xlu0 %298  ;;  %v302_v54 = vpop.permute.xlu1 %301 }
  0xc4   : > { %1974 = vmatprep.mubr.msk.f32.mxu0 %vm332_vm12, %v2643_v43  ;;  %2006 = vmatprep.mubr.msk.f32.mxu1 %vm334_vm13, %v2643_v43  ;;  %vm348_vm12 = vcmp.eq.s32.totalorder %v2986_v37, %v290_v28  ;;  %vm350_vm13 = vcmp.eq.s32.totalorder %v2989_v38, %v290_v28 }
  0xc5   : > { %2281 = vmatprep.subr.mxu0 %v1129_v11  ;;  %2361 = vmatprep.subr.mxu1 %v1161_v12 }
  0xc6   : > { %1975 = vmatmul.mubr.msk.f32.gmra.mxu0 %vm331_vm14, %v2643_v43  ;;  %2007 = vmatmul.mubr.msk.f32.gmra.mxu1 %vm333_vm15, %v2643_v43  ;;  %vm347_vm14 = vcmp.eq.s32.totalorder %v2983_v36, %v290_v28  ;;  %vm349_vm15 = vcmp.eq.s32.totalorder %v2992_v39, %v290_v28 }
  0xc7   : > { %2282 = vmatpush3.msra.mxu0 %v1113_v14  ;;  %2362 = vmatpush3.msra.mxu1 %v1145_v15  ;;  %v513_v59 = vpop.permute.xlu0 %512  ;;  %v516_v62 = vpop.permute.xlu1 %515 }
  0xc8   : > { %1976 = vmatprep.mubr.msk.f32.mxu0 %vm336_vm0, %v2643_v43  ;;  %2008 = vmatprep.mubr.msk.f32.mxu1 %vm338_vm1, %v2643_v43  ;;  %vm352_vm0 = vcmp.eq.s32.totalorder %v2986_v37, %v293_v33  ;;  %vm354_vm1 = vcmp.eq.s32.totalorder %v2989_v38, %v293_v33 }
  0xc9   : > { %2283 = vmatprep.subr.mxu0 %v1128_v16  ;;  %2363 = vmatprep.subr.mxu1 %v1160_v17 }
  0xca   : > { %1977 = vmatmul.mubr.msk.f32.gmra.mxu0 %vm335_vm2, %v2643_v43  ;;  %2009 = vmatmul.mubr.msk.f32.gmra.mxu1 %vm337_vm3, %v2643_v43  ;;  %vm351_vm2 = vcmp.eq.s32.totalorder %v2983_v36, %v293_v33  ;;  %vm353_vm3 = vcmp.eq.s32.totalorder %v2992_v39, %v293_v33 }
  0xcb   : > { %2284 = vmatpush3.msra.mxu0 %v1112_v19  ;;  %2364 = vmatpush3.msra.mxu1 %v1144_v20  ;;  %v519_v63 = vpop.permute.xlu0 %518  ;;  %v522_v0 = vpop.permute.xlu1 %521 }
  0xcc   : > { %1978 = vmatprep.mubr.msk.f32.mxu0 %vm340_vm4, %v2643_v43  ;;  %2010 = vmatprep.mubr.msk.f32.mxu1 %vm342_vm5, %v2643_v43  ;;  %vm356_vm4 = vcmp.eq.s32.totalorder %v2986_v37, %v296_v44  ;;  %vm358_vm5 = vcmp.eq.s32.totalorder %v2989_v38, %v296_v44 }
  0xcd   : > { %2285 = vmatprep.subr.mxu0 %v1127_v21  ;;  %2365 = vmatprep.subr.mxu1 %v1159_v22 }
  0xce   : > { %1979 = vmatmul.mubr.msk.f32.gmra.mxu0 %vm339_vm6, %v2643_v43  ;;  %2011 = vmatmul.mubr.msk.f32.gmra.mxu1 %vm341_vm7, %v2643_v43  ;;  %vm355_vm6 = vcmp.eq.s32.totalorder %v2983_v36, %v296_v44  ;;  %vm357_vm7 = vcmp.eq.s32.totalorder %v2992_v39, %v296_v44 }
  0xcf   : > { %2286 = vmatpush3.msra.mxu0 %v1111_v24  ;;  %2366 = vmatpush3.msra.mxu1 %v1143_v25  ;;  %v525_v1 = vpop.permute.xlu0 %524  ;;  %v528_v2 = vpop.permute.xlu1 %527 }
  0xd0   : > { %1980 = vmatprep.mubr.msk.f32.mxu0 %vm344_vm8, %v2643_v43  ;;  %2012 = vmatprep.mubr.msk.f32.mxu1 %vm346_vm9, %v2643_v43  ;;  %vm360_vm8 = vcmp.eq.s32.totalorder %v2986_v37, %v299_v49  ;;  %vm362_vm9 = vcmp.eq.s32.totalorder %v2989_v38, %v299_v49 }
  0xd1   : > { %2287 = vmatprep.subr.mxu0 %v1126_v26  ;;  %2367 = vmatprep.subr.mxu1 %v1158_v27 }
  0xd2   : > { %1981 = vmatmul.mubr.msk.f32.gmra.mxu0 %vm343_vm10, %v2643_v43  ;;  %2013 = vmatmul.mubr.msk.f32.gmra.mxu1 %vm345_vm11, %v2643_v43  ;;  %vm359_vm10 = vcmp.eq.s32.totalorder %v2983_v36, %v299_v49  ;;  %vm361_vm11 = vcmp.eq.s32.totalorder %v2992_v39, %v299_v49 }
  0xd3   : > { %2288 = vmatpush3.msra.mxu0 %v1110_v29  ;;  %2368 = vmatpush3.msra.mxu1 %v1142_v30  ;;  %v531_v3 = vpop.permute.xlu0 %530  ;;  %v534_v4 = vpop.permute.xlu1 %533 }
  0xd4   : > { %1982 = vmatprep.mubr.msk.f32.mxu0 %vm348_vm12, %v2643_v43  ;;  %2014 = vmatprep.mubr.msk.f32.mxu1 %vm350_vm13, %v2643_v43  ;;  %vm364_vm12 = vcmp.eq.s32.totalorder %v2986_v37, %v302_v54  ;;  %vm366_vm13 = vcmp.eq.s32.totalorder %v2989_v38, %v302_v54 }
  0xd5   : > { %2289 = vmatprep.subr.mxu0 %v1125_v31  ;;  %2369 = vmatprep.subr.mxu1 %v1157_v32 }
  0xd6   : > { %1983 = vmatmul.mubr.msk.f32.gmra.mxu0 %vm347_vm14, %v2643_v43  ;;  %2015 = vmatmul.mubr.msk.f32.gmra.mxu1 %vm349_vm15, %v2643_v43  ;;  %vm363_vm14 = vcmp.eq.s32.totalorder %v2983_v36, %v302_v54  ;;  %vm365_vm15 = vcmp.eq.s32.totalorder %v2992_v39, %v302_v54 }
  0xd7   : > { %2290 = vmatpush3.msra.mxu0 %v1109_v34  ;;  %2370 = vmatpush3.msra.mxu1 %v1141_v40  ;;  %v537_v5 = vpop.permute.xlu0 %536  ;;  %v540_v6 = vpop.permute.xlu1 %539 }
  0xd8   : > { %1984 = vmatprep.mubr.msk.f32.mxu0 %vm352_vm0, %v2643_v43  ;;  %2016 = vmatprep.mubr.msk.f32.mxu1 %vm354_vm1, %v2643_v43  ;;  %vm560_vm0 = vcmp.eq.s32.totalorder %v2986_v37, %v513_v59  ;;  %vm562_vm1 = vcmp.eq.s32.totalorder %v2989_v38, %v513_v59 }
  0xd9   : > { %2291 = vmatprep.subr.mxu0 %v1124_v41  ;;  %2371 = vmatprep.subr.mxu1 %v1156_v42 }
  0xda   : > { %1985 = vmatmul.mubr.msk.f32.gmra.mxu0 %vm351_vm2, %v2643_v43  ;;  %2017 = vmatmul.mubr.msk.f32.gmra.mxu1 %vm353_vm3, %v2643_v43  ;;  %vm559_vm2 = vcmp.eq.s32.totalorder %v2983_v36, %v513_v59  ;;  %vm561_vm3 = vcmp.eq.s32.totalorder %v2992_v39, %v513_v59 }
  0xdb   : > { %2292 = vmatpush3.msra.mxu0 %v1108_v45  ;;  %2372 = vmatpush3.msra.mxu1 %v1140_v46  ;;  %v543_v7 = vpop.permute.xlu0 %542  ;;  %v546_v8 = vpop.permute.xlu1 %545 }
  0xdc   : > { %1986 = vmatprep.mubr.msk.f32.mxu0 %vm356_vm4, %v2643_v43  ;;  %2018 = vmatprep.mubr.msk.f32.mxu1 %vm358_vm5, %v2643_v43  ;;  %vm564_vm4 = vcmp.eq.s32.totalorder %v2986_v37, %v516_v62  ;;  %vm566_vm5 = vcmp.eq.s32.totalorder %v2989_v38, %v516_v62 }
  0xdd   : > { %2293 = vmatprep.subr.mxu0 %v1123_v47  ;;  %2373 = vmatprep.subr.mxu1 %v1155_v48 }
  0xde   : > { %1987 = vmatmul.mubr.msk.f32.gmra.mxu0 %vm355_vm6, %v2643_v43  ;;  %2019 = vmatmul.mubr.msk.f32.gmra.mxu1 %vm357_vm7, %v2643_v43  ;;  %vm563_vm6 = vcmp.eq.s32.totalorder %v2983_v36, %v516_v62  ;;  %vm565_vm7 = vcmp.eq.s32.totalorder %v2992_v39, %v516_v62 }
  0xdf   : > { %2294 = vmatpush3.msra.mxu0 %v1107_v50  ;;  %2374 = vmatpush3.msra.mxu1 %v1139_v51  ;;  %v549_v9 = vpop.permute.xlu0 %548  ;;  %v552_v10 = vpop.permute.xlu1 %551 }
  0xe0   : > { %1988 = vmatprep.mubr.msk.f32.mxu0 %vm360_vm8, %v2643_v43  ;;  %2020 = vmatprep.mubr.msk.f32.mxu1 %vm362_vm9, %v2643_v43  ;;  %vm568_vm8 = vcmp.eq.s32.totalorder %v2986_v37, %v519_v63  ;;  %vm570_vm9 = vcmp.eq.s32.totalorder %v2989_v38, %v519_v63 }
  0xe1   : > { %2295 = vmatprep.subr.mxu0 %v1122_v52  ;;  %2375 = vmatprep.subr.mxu1 %v1154_v53 }
  0xe2   : > { %1989 = vmatmul.mubr.msk.f32.gmra.mxu0 %vm359_vm10, %v2643_v43  ;;  %2021 = vmatmul.mubr.msk.f32.gmra.mxu1 %vm361_vm11, %v2643_v43  ;;  %vm567_vm10 = vcmp.eq.s32.totalorder %v2983_v36, %v519_v63  ;;  %vm569_vm11 = vcmp.eq.s32.totalorder %v2992_v39, %v519_v63 }
  0xe3   : > { %2296 = vmatpush3.msra.mxu0 %v1106_v55  ;;  %2376 = vmatpush3.msra.mxu1 %v1138_v56  ;;  %v555_v11 = vpop.permute.xlu0 %554  ;;  %v558_v12 = vpop.permute.xlu1 %557 }
  0xe4   : > { %1990 = vmatprep.mubr.msk.f32.mxu0 %vm364_vm12, %v2643_v43  ;;  %2022 = vmatprep.mubr.msk.f32.mxu1 %vm366_vm13, %v2643_v43  ;;  %vm572_vm12 = vcmp.eq.s32.totalorder %v2986_v37, %v522_v0  ;;  %vm574_vm13 = vcmp.eq.s32.totalorder %v2989_v38, %v522_v0 }
  0xe5   : > { %2297 = vmatprep.subr.mxu0 %v1121_v57  ;;  %2377 = vmatprep.subr.mxu1 %v1153_v58 }
  0xe6   : > { %1991 = vmatmul.mubr.msk.f32.gmra.mxu0 %vm363_vm14, %v2643_v43  ;;  %2023 = vmatmul.mubr.msk.f32.gmra.mxu1 %vm365_vm15, %v2643_v43  ;;  %vm571_vm14 = vcmp.eq.s32.totalorder %v2983_v36, %v522_v0  ;;  %vm573_vm15 = vcmp.eq.s32.totalorder %v2992_v39, %v522_v0 }
  0xe7   : > { %2298 = vmatpush3.msra.mxu0 %v1105_v60  ;;  %2378 = vmatpush3.msra.mxu1 %v1137_v61 }
  0xe8   : > { %2024 = vmatprep.mubr.msk.f32.mxu0 %vm560_vm0, %v2643_v43  ;;  %2056 = vmatprep.mubr.msk.f32.mxu1 %vm562_vm1, %v2643_v43  ;;  %vm576_vm0 = vcmp.eq.s32.totalorder %v2986_v37, %v525_v1  ;;  %vm578_vm1 = vcmp.eq.s32.totalorder %v2989_v38, %v525_v1 }
  0xea   : > { %2025 = vmatmul.mubr.msk.f32.vlgmr.msra.gmra.mxu0 %vm559_vm2, %v2643_v43  ;;  %2057 = vmatmul.mubr.msk.f32.vlgmr.msra.gmra.mxu1 %vm561_vm3, %v2643_v43  ;;  %vm575_vm2 = vcmp.eq.s32.totalorder %v2983_v36, %v525_v1  ;;  %vm577_vm3 = vcmp.eq.s32.totalorder %v2992_v39, %v525_v1 }
  0xeb   : > { %2026 = vmatprep.mubr.msk.f32.mxu0 %vm564_vm4, %v2643_v43  ;;  %2058 = vmatprep.mubr.msk.f32.mxu1 %vm566_vm5, %v2643_v43  ;;  %vm580_vm4 = vcmp.eq.s32.totalorder %v2986_v37, %v528_v2  ;;  %vm582_vm5 = vcmp.eq.s32.totalorder %v2989_v38, %v528_v2 }
  0xee   : > { %2027 = vmatmul.mubr.msk.f32.gmra.mxu0 %vm563_vm6, %v2643_v43  ;;  %2059 = vmatmul.mubr.msk.f32.gmra.mxu1 %vm565_vm7, %v2643_v43  ;;  %vm579_vm6 = vcmp.eq.s32.totalorder %v2983_v36, %v528_v2  ;;  %vm581_vm7 = vcmp.eq.s32.totalorder %v2992_v39, %v528_v2 }
  0xef   : > { %2028 = vmatprep.mubr.msk.f32.mxu0 %vm568_vm8, %v2643_v43  ;;  %2060 = vmatprep.mubr.msk.f32.mxu1 %vm570_vm9, %v2643_v43  ;;  %vm584_vm8 = vcmp.eq.s32.totalorder %v2986_v37, %v531_v3  ;;  %vm586_vm9 = vcmp.eq.s32.totalorder %v2989_v38, %v531_v3 }
  0xf2   : > { %2029 = vmatmul.mubr.msk.f32.gmra.mxu0 %vm567_vm10, %v2643_v43  ;;  %2061 = vmatmul.mubr.msk.f32.gmra.mxu1 %vm569_vm11, %v2643_v43  ;;  %vm583_vm10 = vcmp.eq.s32.totalorder %v2983_v36, %v531_v3  ;;  %vm585_vm11 = vcmp.eq.s32.totalorder %v2992_v39, %v531_v3 }
  0xf3   : > { %2030 = vmatprep.mubr.msk.f32.mxu0 %vm572_vm12, %v2643_v43  ;;  %2062 = vmatprep.mubr.msk.f32.mxu1 %vm574_vm13, %v2643_v43  ;;  %vm588_vm12 = vcmp.eq.s32.totalorder %v2986_v37, %v534_v4  ;;  %vm590_vm13 = vcmp.eq.s32.totalorder %v2989_v38, %v534_v4 }
  0xf6   : > { %2031 = vmatmul.mubr.msk.f32.gmra.mxu0 %vm571_vm14, %v2643_v43  ;;  %2063 = vmatmul.mubr.msk.f32.gmra.mxu1 %vm573_vm15, %v2643_v43  ;;  %vm587_vm14 = vcmp.eq.s32.totalorder %v2983_v36, %v534_v4  ;;  %vm589_vm15 = vcmp.eq.s32.totalorder %v2992_v39, %v534_v4 }
  0xf7   : > { %2032 = vmatprep.mubr.msk.f32.mxu0 %vm576_vm0, %v2643_v43  ;;  %2064 = vmatprep.mubr.msk.f32.mxu1 %vm578_vm1, %v2643_v43  ;;  %vm592_vm0 = vcmp.eq.s32.totalorder %v2986_v37, %v537_v5  ;;  %vm594_vm1 = vcmp.eq.s32.totalorder %v2989_v38, %v537_v5 }
  0xfa   : > { %2033 = vmatmul.mubr.msk.f32.gmra.mxu0 %vm575_vm2, %v2643_v43  ;;  %2065 = vmatmul.mubr.msk.f32.gmra.mxu1 %vm577_vm3, %v2643_v43  ;;  %vm591_vm2 = vcmp.eq.s32.totalorder %v2983_v36, %v537_v5  ;;  %vm593_vm3 = vcmp.eq.s32.totalorder %v2992_v39, %v537_v5 }
  0xfb   : > { %2034 = vmatprep.mubr.msk.f32.mxu0 %vm580_vm4, %v2643_v43  ;;  %2066 = vmatprep.mubr.msk.f32.mxu1 %vm582_vm5, %v2643_v43  ;;  %vm596_vm4 = vcmp.eq.s32.totalorder %v2986_v37, %v540_v6  ;;  %vm598_vm5 = vcmp.eq.s32.totalorder %v2989_v38, %v540_v6 }
  0xfe   : > { %2035 = vmatmul.mubr.msk.f32.gmra.mxu0 %vm579_vm6, %v2643_v43  ;;  %2067 = vmatmul.mubr.msk.f32.gmra.mxu1 %vm581_vm7, %v2643_v43  ;;  %vm595_vm6 = vcmp.eq.s32.totalorder %v2983_v36, %v540_v6  ;;  %vm597_vm7 = vcmp.eq.s32.totalorder %v2992_v39, %v540_v6 }
  0xff   : > { %2036 = vmatprep.mubr.msk.f32.mxu0 %vm584_vm8, %v2643_v43  ;;  %2068 = vmatprep.mubr.msk.f32.mxu1 %vm586_vm9, %v2643_v43  ;;  %vm600_vm8 = vcmp.eq.s32.totalorder %v2986_v37, %v543_v7  ;;  %vm602_vm9 = vcmp.eq.s32.totalorder %v2989_v38, %v543_v7 }
 0x102   : > { %2037 = vmatmul.mubr.msk.f32.gmra.mxu0 %vm583_vm10, %v2643_v43  ;;  %2069 = vmatmul.mubr.msk.f32.gmra.mxu1 %vm585_vm11, %v2643_v43  ;;  %vm599_vm10 = vcmp.eq.s32.totalorder %v2983_v36, %v543_v7  ;;  %vm601_vm11 = vcmp.eq.s32.totalorder %v2992_v39, %v543_v7 }
 0x103   : > { %2038 = vmatprep.mubr.msk.f32.mxu0 %vm588_vm12, %v2643_v43  ;;  %2070 = vmatprep.mubr.msk.f32.mxu1 %vm590_vm13, %v2643_v43  ;;  %vm604_vm12 = vcmp.eq.s32.totalorder %v2986_v37, %v546_v8  ;;  %vm606_vm13 = vcmp.eq.s32.totalorder %v2989_v38, %v546_v8 }
 0x106   : > { %2039 = vmatmul.mubr.msk.f32.gmra.mxu0 %vm587_vm14, %v2643_v43  ;;  %2071 = vmatmul.mubr.msk.f32.gmra.mxu1 %vm589_vm15, %v2643_v43  ;;  %vm603_vm14 = vcmp.eq.s32.totalorder %v2983_v36, %v546_v8  ;;  %vm605_vm15 = vcmp.eq.s32.totalorder %v2992_v39, %v546_v8 }
 0x107   : > { %2040 = vmatprep.mubr.msk.f32.mxu0 %vm592_vm0, %v2643_v43  ;;  %2072 = vmatprep.mubr.msk.f32.mxu1 %vm594_vm1, %v2643_v43  ;;  %vm608_vm0 = vcmp.eq.s32.totalorder %v2986_v37, %v549_v9  ;;  %vm610_vm1 = vcmp.eq.s32.totalorder %v2989_v38, %v549_v9 }
 0x10a   : > { %2041 = vmatmul.mubr.msk.f32.gmra.mxu0 %vm591_vm2, %v2643_v43  ;;  %2073 = vmatmul.mubr.msk.f32.gmra.mxu1 %vm593_vm3, %v2643_v43  ;;  %vm607_vm2 = vcmp.eq.s32.totalorder %v2983_v36, %v549_v9  ;;  %vm609_vm3 = vcmp.eq.s32.totalorder %v2992_v39, %v549_v9 }
 0x10b   : > { %2042 = vmatprep.mubr.msk.f32.mxu0 %vm596_vm4, %v2643_v43  ;;  %2074 = vmatprep.mubr.msk.f32.mxu1 %vm598_vm5, %v2643_v43  ;;  %vm612_vm4 = vcmp.eq.s32.totalorder %v2986_v37, %v552_v10  ;;  %vm614_vm5 = vcmp.eq.s32.totalorder %v2989_v38, %v552_v10 }
 0x10e   : > { %2043 = vmatmul.mubr.msk.f32.gmra.mxu0 %vm595_vm6, %v2643_v43  ;;  %2075 = vmatmul.mubr.msk.f32.gmra.mxu1 %vm597_vm7, %v2643_v43  ;;  %vm611_vm6 = vcmp.eq.s32.totalorder %v2983_v36, %v552_v10  ;;  %vm613_vm7 = vcmp.eq.s32.totalorder %v2992_v39, %v552_v10 }
 0x10f   : > { %2044 = vmatprep.mubr.msk.f32.mxu0 %vm600_vm8, %v2643_v43  ;;  %2076 = vmatprep.mubr.msk.f32.mxu1 %vm602_vm9, %v2643_v43  ;;  %vm616_vm8 = vcmp.eq.s32.totalorder %v2986_v37, %v555_v11  ;;  %vm618_vm9 = vcmp.eq.s32.totalorder %v2989_v38, %v555_v11 }
 0x112   : > { %2045 = vmatmul.mubr.msk.f32.gmra.mxu0 %vm599_vm10, %v2643_v43  ;;  %2077 = vmatmul.mubr.msk.f32.gmra.mxu1 %vm601_vm11, %v2643_v43  ;;  %vm615_vm10 = vcmp.eq.s32.totalorder %v2983_v36, %v555_v11  ;;  %vm617_vm11 = vcmp.eq.s32.totalorder %v2992_v39, %v555_v11 }
 0x113   : > { %2046 = vmatprep.mubr.msk.f32.mxu0 %vm604_vm12, %v2643_v43  ;;  %2078 = vmatprep.mubr.msk.f32.mxu1 %vm606_vm13, %v2643_v43  ;;  %vm620_vm12 = vcmp.eq.s32.totalorder %v2986_v37, %v558_v12  ;;  %vm622_vm13 = vcmp.eq.s32.totalorder %v2989_v38, %v558_v12 }
 0x116   : > { %2047 = vmatmul.mubr.msk.f32.gmra.mxu0 %vm603_vm14, %v2643_v43  ;;  %2079 = vmatmul.mubr.msk.f32.gmra.mxu1 %vm605_vm15, %v2643_v43  ;;  %vm619_vm14 = vcmp.eq.s32.totalorder %v2983_v36, %v558_v12  ;;  %vm621_vm15 = vcmp.eq.s32.totalorder %v2992_v39, %v558_v12 }
 0x117   : > { %2048 = vmatprep.mubr.msk.f32.mxu0 %vm608_vm0, %v2643_v43  ;;  %2080 = vmatprep.mubr.msk.f32.mxu1 %vm610_vm1, %v2643_v43  ;;  %vm1628_vm0 = vcmask 130112   ;;  %vm1635_vm1 = vcmask 195712  }
 0x11a   : > { %2049 = vmatmul.mubr.msk.f32.gmra.mxu0 %vm607_vm2, %v2643_v43  ;;  %2081 = vmatmul.mubr.msk.f32.gmra.mxu1 %vm609_vm3, %v2643_v43  ;;  %vm1642_vm2 = vcmask 261312   ;;  %vm1649_vm3 = vcmask 326912  }
 0x11b   : > { %2050 = vmatprep.mubr.msk.f32.mxu0 %vm612_vm4, %v2643_v43  ;;  %2082 = vmatprep.mubr.msk.f32.mxu1 %vm614_vm5, %v2643_v43  ;;  %vm1656_vm4 = vcmask 392512   ;;  %vm1663_vm5 = vcmask 458112  }
 0x11e   : > { %2051 = vmatmul.mubr.msk.f32.gmra.mxu0 %vm611_vm6, %v2643_v43  ;;  %2083 = vmatmul.mubr.msk.f32.gmra.mxu1 %vm613_vm7, %v2643_v43  ;;  %vm1670_vm6 = vcmask 523712   ;;  %vm1677_vm7 = vcmask 589312  }
 0x11f   : > { %2052 = vmatprep.mubr.msk.f32.mxu0 %vm616_vm8, %v2643_v43  ;;  %2084 = vmatprep.mubr.msk.f32.mxu1 %vm618_vm9, %v2643_v43  ;;  %vm1684_vm8 = vcmask 654912   ;;  %vm1691_vm9 = vcmask 720512  }
 0x122   : > { %2053 = vmatmul.mubr.msk.f32.gmra.mxu0 %vm615_vm10, %v2643_v43  ;;  %2085 = vmatmul.mubr.msk.f32.gmra.mxu1 %vm617_vm11, %v2643_v43  ;;  %vm1698_vm10 = vcmask 786112   ;;  %vm1705_vm11 = vcmask 851712  }
 0x123   : > { %2054 = vmatprep.mubr.msk.f32.mxu0 %vm620_vm12, %v2643_v43  ;;  %2086 = vmatprep.mubr.msk.f32.mxu1 %vm622_vm13, %v2643_v43  ;;  %vm1712_vm12 = vcmask 917312   ;;  %vm1719_vm13 = vcmask 982912  }
 0x126   : > { %2055 = vmatmul.mubr.msk.f32.gmra.mxu0 %vm619_vm14, %v2643_v43  ;;  %2087 = vmatmul.mubr.msk.f32.gmra.mxu1 %vm621_vm15, %v2643_v43  ;;  %vm1726_vm14 = vcmask 1048512  }
 0x16a   : > { %v2139_v13 = vpop.f32.mrf.mxu0  ;;  %v2219_v14 = vpop.f32.mrf.mxu1 }
 0x16c   : > { %v2140_v15 = vpop.f32.mrf.mxu0  ;;  %v2220_v16 = vpop.f32.mrf.mxu1 }
 0x16d   : > { %v2141_v17 = vadd.f32 %v2140_v15, %v2139_v13  ;;  %v2221_v37 = vadd.f32 %v2220_v16, %v2219_v14 }
 0x16e   : > { %v2142_v18 = vpop.f32.mrf.mxu0  ;;  %v2222_v38 = vpop.f32.mrf.mxu1 }
 0x16f   : > { %v3250_v19 = vadd.f32 %v2221_v37, %v2141_v17 }
 0x170   : > { %v2143_v20 = vpop.f32.mrf.mxu0  ;;  %v2223_v21 = vpop.f32.mrf.mxu1 }
 0x171   : > { %v2144_v22 = vadd.f32 %v2143_v20, %v2142_v18  ;;  %v2224_v23 = vadd.f32 %v2223_v21, %v2222_v38 }
 0x172   : > { %v2145_v24 = vpop.f32.mrf.mxu0  ;;  %v2225_v39 = vpop.f32.mrf.mxu1 }
 0x173   : > { %v3252_v25 = vadd.f32 %v2224_v23, %v2144_v22 }
 0x174   : > { %v2146_v26 = vpop.f32.mrf.mxu0  ;;  %v2226_v43 = vpop.f32.mrf.mxu1 }
 0x175   : > { %v2147_v27 = vadd.f32 %v2146_v26, %v2145_v24  ;;  %v2227_v28 = vadd.f32 %v2226_v43, %v2225_v39 }
 0x176   : > { %v2148_v29 = vpop.f32.mrf.mxu0  ;;  %v2228_v30 = vpop.f32.mrf.mxu1 }
 0x177   : > { %v3254_v31 = vadd.f32 %v2227_v28, %v2147_v27 }
 0x178   : > { %v2149_v32 = vpop.f32.mrf.mxu0  ;;  %v2229_v33 = vpop.f32.mrf.mxu1 }
 0x179   : > { %v2150_v34 = vadd.f32 %v2149_v32, %v2148_v29  ;;  %v2230_v40 = vadd.f32 %v2229_v33, %v2228_v30 }
 0x17a   : > { %v2151_v41 = vpop.f32.mrf.mxu0  ;;  %v2231_v42 = vpop.f32.mrf.mxu1 }
 0x17b   : > { %v3256_v44 = vadd.f32 %v2230_v40, %v2150_v34 }
 0x17c   : > { %v2152_v45 = vpop.f32.mrf.mxu0  ;;  %v2232_v46 = vpop.f32.mrf.mxu1 }
 0x17d   : > { %v2153_v47 = vadd.f32 %v2152_v45, %v2151_v41  ;;  %v2233_v48 = vadd.f32 %v2232_v46, %v2231_v42 }
 0x17e   : > { %v2154_v49 = vpop.f32.mrf.mxu0  ;;  %v2234_v50 = vpop.f32.mrf.mxu1 }
 0x17f   : > { %v3258_v51 = vadd.f32 %v2233_v48, %v2153_v47 }
 0x180   : > { %v2155_v52 = vpop.f32.mrf.mxu0  ;;  %v2235_v53 = vpop.f32.mrf.mxu1 }
 0x181   : > { %v2156_v54 = vadd.f32 %v2155_v52, %v2154_v49  ;;  %v2236_v55 = vadd.f32 %v2235_v53, %v2234_v50 }
 0x182   : > { %v2157_v56 = vpop.f32.mrf.mxu0  ;;  %v2237_v57 = vpop.f32.mrf.mxu1 }
 0x183   : > { %v3260_v58 = vadd.f32 %v2236_v55, %v2156_v54 }
 0x184   : > { %v2158_v59 = vpop.f32.mrf.mxu0  ;;  %v2238_v60 = vpop.f32.mrf.mxu1 }
 0x185   : > { %v2159_v61 = vadd.f32 %v2158_v59, %v2157_v56  ;;  %v2239_v62 = vadd.f32 %v2238_v60, %v2237_v57 }
 0x186   : > { %v2160_v63 = vpop.f32.mrf.mxu0  ;;  %v2240_v0 = vpop.f32.mrf.mxu1 }
 0x187   : > { %v3262_v1 = vadd.f32 %v2239_v62, %v2159_v61 }
 0x188   : > { %v2161_v2 = vpop.f32.mrf.mxu0  ;;  %v2241_v3 = vpop.f32.mrf.mxu1 }
 0x189   : > { %v2162_v4 = vadd.f32 %v2161_v2, %v2160_v63  ;;  %v2242_v5 = vadd.f32 %v2241_v3, %v2240_v0 }
 0x18a   : > { %v2163_v6 = vpop.f32.mrf.mxu0  ;;  %v2243_v7 = vpop.f32.mrf.mxu1 }
 0x18b   : > { %v3264_v8 = vadd.f32 %v2242_v5, %v2162_v4 }
 0x18c   : > { %v2164_v9 = vpop.f32.mrf.mxu0  ;;  %v2244_v10 = vpop.f32.mrf.mxu1 }
 0x18d   : > { %v2165_v11 = vadd.f32 %v2164_v9, %v2163_v6  ;;  %v2245_v12 = vadd.f32 %v2244_v10, %v2243_v7 }
 0x18e   : > { %v2166_v13 = vpop.f32.mrf.mxu0  ;;  %v2246_v14 = vpop.f32.mrf.mxu1 }
 0x18f   : > { %v3266_v15 = vadd.f32 %v2245_v12, %v2165_v11 }
 0x190   : > { %v2167_v16 = vpop.f32.mrf.mxu0  ;;  %v2247_v17 = vpop.f32.mrf.mxu1 }
 0x191   : > { %v2168_v37 = vadd.f32 %v2167_v16, %v2166_v13  ;;  %v2248_v18 = vadd.f32 %v2247_v17, %v2246_v14 }
 0x192   : > { %v2169_v38 = vpop.f32.mrf.mxu0  ;;  %v2249_v20 = vpop.f32.mrf.mxu1 }
 0x193   : > { %v3268_v21 = vadd.f32 %v2248_v18, %v2168_v37 }
 0x194   : > { %v2170_v22 = vpop.f32.mrf.mxu0  ;;  %v2250_v23 = vpop.f32.mrf.mxu1 }
 0x195   : > { %v2171_v24 = vadd.f32 %v2170_v22, %v2169_v38  ;;  %v2251_v39 = vadd.f32 %v2250_v23, %v2249_v20 }
 0x196   : > { %v2172_v26 = vpop.f32.mrf.mxu0  ;;  %v2252_v43 = vpop.f32.mrf.mxu1 }
 0x197   : > { %v3270_v27 = vadd.f32 %v2251_v39, %v2171_v24 }
 0x198   : > { %v2173_v28 = vpop.f32.mrf.mxu0  ;;  %v2253_v29 = vpop.f32.mrf.mxu1 }
 0x199   : > { %v2174_v30 = vadd.f32 %v2173_v28, %v2172_v26  ;;  %v2254_v32 = vadd.f32 %v2253_v29, %v2252_v43 }
 0x19a   : > { %v2175_v33 = vpop.f32.mrf.mxu0  ;;  %v2255_v34 = vpop.f32.mrf.mxu1 }
 0x19b   : > { %v3272_v40 = vadd.f32 %v2254_v32, %v2174_v30 }
 0x19c   : > { %v2176_v41 = vpop.f32.mrf.mxu0  ;;  %v2256_v42 = vpop.f32.mrf.mxu1 }
 0x19d   : > { %v2177_v45 = vadd.f32 %v2176_v41, %v2175_v33  ;;  %v2257_v46 = vadd.f32 %v2256_v42, %v2255_v34 }
 0x19e   : > { %v2178_v47 = vpop.f32.mrf.mxu0  ;;  %v2258_v48 = vpop.f32.mrf.mxu1 }
 0x19f   : > { %v3274_v49 = vadd.f32 %v2257_v46, %v2177_v45 }
 0x1a0   : > { %v2179_v50 = vpop.f32.mrf.mxu0  ;;  %v2259_v52 = vpop.f32.mrf.mxu1 }
 0x1a1   : > { %v2180_v53 = vadd.f32 %v2179_v50, %v2178_v47  ;;  %v2260_v54 = vadd.f32 %v2259_v52, %v2258_v48 }
 0x1a2   : > { %v2181_v55 = vpop.f32.mrf.mxu0  ;;  %v2261_v56 = vpop.f32.mrf.mxu1 }
 0x1a3   : > { %v3276_v57 = vadd.f32 %v2260_v54, %v2180_v53 }
 0x1a4   : > { %v2182_v59 = vpop.f32.mrf.mxu0  ;;  %v2262_v60 = vpop.f32.mrf.mxu1 }
 0x1a5   : > { %v2183_v61 = vadd.f32 %v2182_v59, %v2181_v55  ;;  %v2263_v62 = vadd.f32 %v2262_v60, %v2261_v56 }
 0x1a6   : > { %v2184_v63 = vpop.f32.mrf.mxu0  ;;  %v2264_v0 = vpop.f32.mrf.mxu1 }
 0x1a7   : > { %v3278_v2 = vadd.f32 %v2263_v62, %v2183_v61 }
 0x1a8   : > { %v2185_v3 = vpop.f32.mrf.mxu0  ;;  %v2265_v4 = vpop.f32.mrf.mxu1 }
 0x1a9   : > { %v2186_v5 = vadd.f32 %v2185_v3, %v2184_v63  ;;  %v2266_v6 = vadd.f32 %v2265_v4, %v2264_v0 }
 0x1aa   : > { %v2299_v7 = vpop.f32.mrf.mxu0  ;;  %v2379_v9 = vpop.f32.mrf.mxu1 }
 0x1ab   : > { %v3280_v10 = vadd.f32 %v2266_v6, %v2186_v5 }
 0x1ac   : > { %v2300_v11 = vpop.f32.mrf.mxu0  ;;  %v2380_v12 = vpop.f32.mrf.mxu1 }
 0x1ad   : > { %v2301_v13 = vadd.f32 %v2300_v11, %v2299_v7  ;;  %v2381_v14 = vadd.f32 %v2380_v12, %v2379_v9 }
 0x1ae   : > { %v2302_v16 = vpop.f32.mrf.mxu0  ;;  %v2382_v17 = vpop.f32.mrf.mxu1 }
 0x1af   : > { %v1381_v37 = vadd.f32 %v2381_v14, %v2301_v13 }
 0x1b0   : > { %v2303_v18 = vpop.f32.mrf.mxu0  ;;  %v2383_v38 = vpop.f32.mrf.mxu1 }
 0x1b1   : > { %v2304_v20 = vadd.f32 %v2303_v18, %v2302_v16  ;;  %v2384_v22 = vadd.f32 %v2383_v38, %v2382_v17  ;;  %v1459_v23 = vmul.f32 %v1381_v37, %v3250_v19 }
 0x1b2   : > { %v2305_v24 = vpop.f32.mrf.mxu0  ;;  %v2385_v39 = vpop.f32.mrf.mxu1 }
 0x1b3   : > { %v1386_v26 = vadd.f32 %v2384_v22, %v2304_v20  ;;  %1475 = vadd.xlane.f32.xlu0 %v1459_v23 }
 0x1b4   : > { %v2306_v43 = vpop.f32.mrf.mxu0  ;;  %v2386_v28 = vpop.f32.mrf.mxu1 }
 0x1b5   : > { %v2307_v29 = vadd.f32 %v2306_v43, %v2305_v24  ;;  %v2387_v30 = vadd.f32 %v2386_v28, %v2385_v39  ;;  %v1460_v32 = vmul.f32 %v1386_v26, %v3252_v25 }
 0x1b6   : > { %v2308_v33 = vpop.f32.mrf.mxu0  ;;  %v2388_v34 = vpop.f32.mrf.mxu1 }
 0x1b7   : > { %v1391_v41 = vadd.f32 %v2387_v30, %v2307_v29  ;;  %1477 = vadd.xlane.f32.xlu1 %v1460_v32 }
 0x1b8   : > { %v2309_v42 = vpop.f32.mrf.mxu0  ;;  %v2389_v45 = vpop.f32.mrf.mxu1 }
 0x1b9   : > { %v2310_v46 = vadd.f32 %v2309_v42, %v2308_v33  ;;  %v2390_v47 = vadd.f32 %v2389_v45, %v2388_v34  ;;  %v1461_v19 = vmul.f32 %v1391_v41, %v3254_v31 }
 0x1ba   : > { %v2311_v48 = vpop.f32.mrf.mxu0  ;;  %v2391_v50 = vpop.f32.mrf.mxu1 }
 0x1bb   : > { %v1396_v52 = vadd.f32 %v2390_v47, %v2310_v46  ;;  %1479 = vadd.xlane.f32.xlu0 %v1461_v19 }
 0x1bc   : > { %v2312_v53 = vpop.f32.mrf.mxu0  ;;  %v2392_v54 = vpop.f32.mrf.mxu1 }
 0x1bd   : > { %v2313_v55 = vadd.f32 %v2312_v53, %v2311_v48  ;;  %v2393_v56 = vadd.f32 %v2392_v54, %v2391_v50  ;;  %v1462_v25 = vmul.f32 %v1396_v52, %v3256_v44 }
 0x1be   : > { %v2314_v59 = vpop.f32.mrf.mxu0  ;;  %v2394_v60 = vpop.f32.mrf.mxu1 }
 0x1bf   : > { %v1401_v61 = vadd.f32 %v2393_v56, %v2313_v55  ;;  %1481 = vadd.xlane.f32.xlu0 %v1462_v25 }
 0x1c0   : > { %v2315_v62 = vpop.f32.mrf.mxu0  ;;  %v2395_v63 = vpop.f32.mrf.mxu1 }
 0x1c1   : > { %v2316_v0 = vadd.f32 %v2315_v62, %v2314_v59  ;;  %v2396_v3 = vadd.f32 %v2395_v63, %v2394_v60  ;;  %v1463_v31 = vmul.f32 %v1401_v61, %v3258_v51 }
 0x1c2   : > { %v2317_v4 = vpop.f32.mrf.mxu0  ;;  %v2397_v5 = vpop.f32.mrf.mxu1 }
 0x1c3   : > { %v1406_v6 = vadd.f32 %v2396_v3, %v2316_v0  ;;  %1483 = vadd.xlane.f32.xlu1 %v1463_v31 }
 0x1c4   : > { %v2318_v7 = vpop.f32.mrf.mxu0  ;;  %v2398_v9 = vpop.f32.mrf.mxu1 }
 0x1c5   : > { %v2319_v11 = vadd.f32 %v2318_v7, %v2317_v4  ;;  %v2399_v12 = vadd.f32 %v2398_v9, %v2397_v5  ;;  %v1464_v44 = vmul.f32 %v1406_v6, %v3260_v58 }
 0x1c6   : > { %v2320_v13 = vpop.f32.mrf.mxu0  ;;  %v2400_v14 = vpop.f32.mrf.mxu1 }
 0x1c7   : > { %v1411_v16 = vadd.f32 %v2399_v12, %v2319_v11  ;;  %1485 = vadd.xlane.f32.xlu0 %v1464_v44 }
 0x1c8   : > { %v2321_v17 = vpop.f32.mrf.mxu0  ;;  %v2401_v37 = vpop.f32.mrf.mxu1 }
 0x1c9   : > { %v2322_v18 = vadd.f32 %v2321_v17, %v2320_v13  ;;  %v2402_v38 = vadd.f32 %v2401_v37, %v2400_v14  ;;  %v1465_v51 = vmul.f32 %v1411_v16, %v3262_v1 }
 0x1ca   : > { %v2323_v20 = vpop.f32.mrf.mxu0  ;;  %v2403_v22 = vpop.f32.mrf.mxu1 }
 0x1cb   : > { %v1416_v23 = vadd.f32 %v2402_v38, %v2322_v18  ;;  %1487 = vadd.xlane.f32.xlu1 %v1465_v51 }
 0x1cc   : > { %v2324_v24 = vpop.f32.mrf.mxu0  ;;  %v2404_v39 = vpop.f32.mrf.mxu1 }
 0x1cd   : > { %v2325_v26 = vadd.f32 %v2324_v24, %v2323_v20  ;;  %v2405_v43 = vadd.f32 %v2404_v39, %v2403_v22  ;;  %v1466_v58 = vmul.f32 %v1416_v23, %v3264_v8 }
 0x1ce   : > { %v2326_v28 = vpop.f32.mrf.mxu0  ;;  %v2406_v29 = vpop.f32.mrf.mxu1 }
 0x1cf   : > { %v1421_v30 = vadd.f32 %v2405_v43, %v2325_v26  ;;  %1489 = vadd.xlane.f32.xlu0 %v1466_v58 }
 0x1d0   : > { %v2327_v32 = vpop.f32.mrf.mxu0  ;;  %v2407_v33 = vpop.f32.mrf.mxu1 }
 0x1d1   : > { %v2328_v34 = vadd.f32 %v2327_v32, %v2326_v28  ;;  %v2408_v41 = vadd.f32 %v2407_v33, %v2406_v29  ;;  %v1467_v1 = vmul.f32 %v1421_v30, %v3266_v15 }
 0x1d2   : > { %v2329_v42 = vpop.f32.mrf.mxu0  ;;  %v2409_v45 = vpop.f32.mrf.mxu1 }
 0x1d3   : > { %v1426_v46 = vadd.f32 %v2408_v41, %v2328_v34  ;;  %1491 = vadd.xlane.f32.xlu1 %v1467_v1 }
 0x1d4   : > { %v2330_v47 = vpop.f32.mrf.mxu0  ;;  %v2410_v19 = vpop.f32.mrf.mxu1 }
 0x1d5   : > { %v2331_v48 = vadd.f32 %v2330_v47, %v2329_v42  ;;  %v2411_v50 = vadd.f32 %v2410_v19, %v2409_v45  ;;  %v1468_v8 = vmul.f32 %v1426_v46, %v3268_v21 }
 0x1d6   : > { %v2332_v52 = vpop.f32.mrf.mxu0  ;;  %v2412_v53 = vpop.f32.mrf.mxu1 }
 0x1d7   : > { %v1431_v54 = vadd.f32 %v2411_v50, %v2331_v48  ;;  %1493 = vadd.xlane.f32.xlu0 %v1468_v8 }
 0x1d8   : > { %v2333_v55 = vpop.f32.mrf.mxu0  ;;  %v2413_v56 = vpop.f32.mrf.mxu1 }
 0x1d9   : > { %v2334_v25 = vadd.f32 %v2333_v55, %v2332_v52  ;;  %v2414_v59 = vadd.f32 %v2413_v56, %v2412_v53  ;;  %v1469_v15 = vmul.f32 %v1431_v54, %v3270_v27 }
 0x1da   : > { %v2335_v60 = vpop.f32.mrf.mxu0  ;;  %v2415_v61 = vpop.f32.mrf.mxu1 }
 0x1db   : > { %v1436_v62 = vadd.f32 %v2414_v59, %v2334_v25  ;;  %1495 = vadd.xlane.f32.xlu1 %v1469_v15 }
 0x1dc   : > { %v2336_v63 = vpop.f32.mrf.mxu0  ;;  %v2416_v0 = vpop.f32.mrf.mxu1 }
 0x1dd   : > { %v2337_v3 = vadd.f32 %v2336_v63, %v2335_v60  ;;  %v2417_v31 = vadd.f32 %v2416_v0, %v2415_v61  ;;  %v1470_v21 = vmul.f32 %v1436_v62, %v3272_v40 }
 0x1de   : > { %v2338_v4 = vpop.f32.mrf.mxu0  ;;  %v2418_v5 = vpop.f32.mrf.mxu1 }
 0x1df   : > { %v1441_v6 = vadd.f32 %v2417_v31, %v2337_v3  ;;  %1497 = vadd.xlane.f32.xlu0 %v1470_v21 }
 0x1e0   : > { %v2339_v7 = vpop.f32.mrf.mxu0  ;;  %v2419_v9 = vpop.f32.mrf.mxu1 }
 0x1e1   : > { %v2340_v11 = vadd.f32 %v2339_v7, %v2338_v4  ;;  %v2420_v12 = vadd.f32 %v2419_v9, %v2418_v5  ;;  %v1471_v27 = vmul.f32 %v1441_v6, %v3274_v49 }
 0x1e2   : > { %v2341_v44 = vpop.f32.mrf.mxu0  ;;  %v2421_v13 = vpop.f32.mrf.mxu1 }
 0x1e3   : > { %v1446_v14 = vadd.f32 %v2420_v12, %v2340_v11  ;;  %1499 = vadd.xlane.f32.xlu1 %v1471_v27 }
 0x1e4   : > { %v2342_v16 = vpop.f32.mrf.mxu0  ;;  %v2422_v17 = vpop.f32.mrf.mxu1 }
 0x1e5   : > { %v2343_v37 = vadd.f32 %v2342_v16, %v2341_v44  ;;  %v2423_v18 = vadd.f32 %v2422_v17, %v2421_v13  ;;  %v1472_v40 = vmul.f32 %v1446_v14, %v3276_v57 }
 0x1e6   : > { %v2344_v38 = vpop.f32.mrf.mxu0  ;;  %v2424_v51 = vpop.f32.mrf.mxu1 }
 0x1e7   : > { %v1451_v20 = vadd.f32 %v2423_v18, %v2343_v37  ;;  %1501 = vadd.xlane.f32.xlu0 %v1472_v40 }
 0x1e8   : > { %v2345_v22 = vpop.f32.mrf.mxu0  ;;  %v2425_v23 = vpop.f32.mrf.mxu1 }
 0x1e9   : > { %v2346_v24 = vadd.f32 %v2345_v22, %v2344_v38  ;;  %v2426_v39 = vadd.f32 %v2425_v23, %v2424_v51  ;;  %v1473_v49 = vmul.f32 %v1451_v20, %v3278_v2 }
 0x1eb   : > { %v1456_v26 = vadd.f32 %v2426_v39, %v2346_v24  ;;  %1503 = vadd.xlane.f32.xlu1 %v1473_v49  ;;  %v3299_v39 = vshrl.u32 %v234_v35, 7  ;;  %v1644_v35 = vadd.s32 4294967264, %v2983_v36 }
 0x1ed   : > { %v1474_v43 = vmul.f32 %v1456_v26, %v3280_v10  ;;  %v1623_v26 = vadd.s32 4294967288, %v2983_v36 }
 0x1ef   : > { %1505 = vadd.xlane.f32.xlu0 %v1474_v43 }
 0x23c   : > { %v1476_v58 = vpop.xlane.xlu0 %1475 }
 0x23d   : > { %v2088_v33 = vmul.f32 -1.442695, %v1476_v58  ;;  %v1630_v58 = vadd.s32 4294967280, %v2983_v36 }
 0x23f   : > { %2483 = vpow2.f32 %v2088_v33  ;;  %v1626_v33 = vsub.s32 %v1623_v26, %v3299_v39 }
 0x240   : > { %v1478_v29 = vpop.xlane.xlu1 %1477 }
 0x241   : > { %v2089_v41 = vmul.f32 -1.442695, %v1478_v29  ;;  %v1637_v29 = vadd.s32 4294967272, %v2983_v36 }
 0x243   : > { %2485 = vpow2.f32 %v2089_v41 }
 0x244   : > { %v1480_v28 = vpop.xlane.xlu0 %1479 }
 0x245   : > { %v2090_v42 = vmul.f32 -1.442695, %v1480_v28 }
 0x247   : > { %2487 = vpow2.f32 %v2090_v42  ;;  %v1633_v42 = vsub.s32 %v1630_v58, %v3299_v39 }
 0x248   : > { %v1482_v30 = vpop.xlane.xlu0 %1481 }
 0x249   : > { %v2091_v45 = vmul.f32 -1.442695, %v1482_v30 }
 0x24b   : > { %2489 = vpow2.f32 %v2091_v45  ;;  %v1658_v45 = vadd.s32 4294967248, %v2983_v36 }
 0x24c   : > { %v1484_v57 = vpop.xlane.xlu1 %1483  ;;  %v2484_v59 = vpop.eup %2483 }
 0x24d   : > { %v2092_v2 = vmul.f32 -1.442695, %v1484_v57  ;;  %v1555_v63 = vadd.f32 1.0, %v2484_v59  ;;  %v1621_v57 = vsub.s32 %v2983_v36, %v3299_v39 }
 0x24f   : > { %2491 = vpow2.f32 %v2092_v2 }
 0x250   : > { %v1486_v32 = vpop.xlane.xlu0 %1485  ;;  %v2486_v61 = vpop.eup %2485 }
 0x251   : > { %v2093_v10 = vmul.f32 -1.442695, %v1486_v32  ;;  %v1556_v31 = vadd.f32 1.0, %v2486_v61 }
 0x253   : > { %2493 = vpow2.f32 %v2093_v10 }
 0x254   : > { %v1488_v34 = vpop.xlane.xlu1 %1487  ;;  %v2488_v62 = vpop.eup %2487 }
 0x255   : > { %v2094_v19 = vmul.f32 -1.442695, %v1488_v34  ;;  %v1557_v5 = vadd.f32 1.0, %v2488_v62  ;;  %v1651_v34 = vadd.s32 4294967256, %v2983_v36 }
 0x257   : > { %2495 = vpow2.f32 %v2094_v19  ;;  %v1647_v19 = vsub.s32 %v1644_v35, %v3299_v39 }
 0x258   : > { %v1490_v1 = vpop.xlane.xlu0 %1489  ;;  %v2490_v0 = vpop.eup %2489 }
 0x259   : > { %v2095_v48 = vmul.f32 -1.442695, %v1490_v1  ;;  %v1558_v7 = vadd.f32 1.0, %v2490_v0 }
 0x25b   : > { %2497 = vpow2.f32 %v2095_v48  ;;  %v1672_v48 = vadd.s32 4294967232, %v2983_v36 }
 0x25c   : > { %v1492_v46 = vpop.xlane.xlu1 %1491  ;;  %v2492_v4 = vpop.eup %2491 }
 0x25d   : > { %v2096_v8 = vmul.f32 -1.442695, %v1492_v46  ;;  %v1559_v27 = vadd.f32 1.0, %v2492_v4  ;;  %v1665_v46 = vadd.s32 4294967240, %v2983_v36 }
 0x25f   : > { %2499 = vpow2.f32 %v2096_v8  ;;  %v1668_v59 = vsub.s32 %v1665_v46, %v3299_v39 }
 0x260   : > { %v1494_v47 = vpop.xlane.xlu0 %1493  ;;  %v2494_v6 = vpop.eup %2493 }
 0x261   : > { %v2097_v53 = vmul.f32 -1.442695, %v1494_v47  ;;  %v1560_v14 = vadd.f32 1.0, %v2494_v6  ;;  %v1640_v47 = vsub.s32 %v1637_v29, %v3299_v39 }
 0x263   : > { %2501 = vpow2.f32 %v2097_v53  ;;  %v1679_v53 = vadd.s32 4294967224, %v2983_v36 }
 0x264   : > { %v1496_v50 = vpop.xlane.xlu1 %1495  ;;  %v2496_v9 = vpop.eup %2495 }
 0x265   : > { %v2098_v54 = vmul.f32 -1.442695, %v1496_v50  ;;  %v1561_v17 = vadd.f32 1.0, %v2496_v9  ;;  %v1707_v9 = vadd.s32 4294967192, %v2983_v36 }
 0x267   : > { %2503 = vpow2.f32 %v2098_v54 }
 0x268   : > { %v1498_v52 = vpop.xlane.xlu0 %1497  ;;  %v2498_v12 = vpop.eup %2497 }
 0x269   : > { %v2099_v55 = vmul.f32 -1.442695, %v1498_v52  ;;  %v1562_v18 = vadd.f32 1.0, %v2498_v12  ;;  %v1654_v52 = vsub.s32 %v1651_v34, %v3299_v39 }
 0x26b   : > { %2505 = vpow2.f32 %v2099_v55 }
 0x26c   : > { %v1500_v56 = vpop.xlane.xlu1 %1499  ;;  %v2500_v13 = vpop.eup %2499 }
 0x26d   : > { %v2100_v25 = vmul.f32 -1.442695, %v1500_v56  ;;  %v1563_v38 = vadd.f32 1.0, %v2500_v13  ;;  %v1714_v13 = vadd.s32 4294967184, %v2983_v36 }
 0x26f   : > { %2507 = vpow2.f32 %v2100_v25  ;;  %v1661_v25 = vsub.s32 %v1658_v45, %v3299_v39 }
 0x270   : > { %v1502_v15 = vpop.xlane.xlu0 %1501  ;;  %v2502_v16 = vpop.eup %2501 }
 0x271   : > { %v2101_v60 = vmul.f32 -1.442695, %v1502_v15  ;;  %v1564_v20 = vadd.f32 1.0, %v2502_v16  ;;  %v1686_v15 = vadd.s32 4294967216, %v2983_v36 }
 0x273   : > { %2509 = vpow2.f32 %v2101_v60 }
 0x274   : > { %v1504_v3 = vpop.xlane.xlu1 %1503  ;;  %2511 = vrcp.f32 %v1555_v63  ;;  %v2504_v37 = vpop.eup %2503  ;;  %v1693_v63 = vadd.s32 4294967208, %v2983_v36 }
 0x275   : > { %v2102_v21 = vmul.f32 -1.442695, %v1504_v3  ;;  %v1565_v22 = vadd.f32 1.0, %v2504_v37 }
 0x276   : > { %v1696_v37 = vsub.s32 %v1693_v63, %v3299_v39 }
 0x277   : > { %2513 = vpow2.f32 %v2102_v21  ;;  %v1700_v21 = vadd.s32 4294967200, %v2983_v36 }
 0x278   : > { %v1506_v11 = vpop.xlane.xlu0 %1505  ;;  %2515 = vrcp.f32 %v1556_v31  ;;  %v2506_v40 = vpop.eup %2505  ;;  %v1675_v31 = vsub.s32 %v1672_v48, %v3299_v39 }
 0x279   : > { %v2103_v44 = vmul.f32 -1.442695, %v1506_v11  ;;  %2517 = vrcp.f32 %v1557_v5  ;;  %v1566_v23 = vadd.f32 1.0, %v2506_v40 }
 0x27a   : > { %2519 = vrcp.f32 %v1558_v7  ;;  %v1682_v7 = vsub.s32 %v1679_v53, %v3299_v39 }
 0x27b   : > { %2521 = vpow2.f32 %v2103_v44  ;;  %v1689_v44 = vsub.s32 %v1686_v15, %v3299_v39 }
 0x27c   : > { %2523 = vrcp.f32 %v1559_v27  ;;  %v2508_v51 = vpop.eup %2507 }
 0x27d   : > { %2525 = vrcp.f32 %v1560_v14  ;;  %v1567_v49 = vadd.f32 1.0, %v2508_v51  ;;  %v1703_v51 = vsub.s32 %v1700_v21, %v3299_v39 }
 0x27e   : > { %2527 = vrcp.f32 %v1561_v17 }
 0x27f   : > { %2529 = vrcp.f32 %v1562_v18 }
 0x280   : > { %v2510_v24 = vpop.eup %2509  ;;  %2531 = vrcp.f32 %v1563_v38 }
 0x281   : > { %2533 = vrcp.f32 %v1564_v20  ;;  %v1568_v43 = vadd.f32 1.0, %v2510_v24  ;;  %v2512_v28 = vpop.eup %2511  ;;  %v1710_v24 = vsub.s32 %v1707_v9, %v3299_v39 }
 0x282   : > { %2535 = vrcp.f32 %v1565_v22  ;;  %v1622_v61 = vrot.slane %v2512_v28, %v1621_v57  ;;  %v1717_v28 = vsub.s32 %v1714_v13, %v3299_v39 }
 0x283   : > { %2537 = vrcp.f32 %v1566_v23 }
 0x284   : > { %v2514_v30 = vpop.eup %2513  ;;  %2539 = vrcp.f32 %v1567_v49  ;;  %v1721_v49 = vadd.s32 4294967176, %v2983_v36 }
 0x285   : > { %v2516_v32 = vpop.eup %2515  ;;  %2541 = vrcp.f32 %v1568_v43  ;;  %v1569_v41 = vadd.f32 1.0, %v2514_v30 }
 0x286   : > { %v2518_v1 = vpop.eup %2517  ;;  %v1627_v8 = vrot.slane %v2516_v32, %v1626_v33  ;;  %v1724_v34 = vsub.s32 %v1721_v49, %v3299_v39 }
 0x287   : > { %v2520_v2 = vpop.eup %2519  ;;  %2543 = vrcp.f32 %v1569_v41  ;;  %v1634_v56 = vrot.slane %v2518_v1, %v1633_v42 }
 0x288   : > { %v2522_v10 = vpop.eup %2521  ;;  %v1641_v62 = vrot.slane %v2520_v2, %v1640_v47  ;;  %v1629_v5 = vsel %vm1628_vm0, %v1627_v8, %v1622_v61 }
 0x289   : > { %v2524_v50 = vpop.eup %2523  ;;  %v1570_v54 = vadd.f32 1.0, %v2522_v10  ;;  %v1636_v12 = vsel %vm1635_vm1, %v1634_v56, %v1629_v5 }
 0x28a   : > { %v2526_v55 = vpop.eup %2525  ;;  %v1648_v3 = vrot.slane %v2524_v50, %v1647_v19  ;;  %v1643_v16 = vsel %vm1642_vm2, %v1641_v62, %v1636_v12 }
 0x28b   : > { %v2528_v60 = vpop.eup %2527  ;;  %2545 = vrcp.f32 %v1570_v54  ;;  %v1655_v6 = vrot.slane %v2526_v55, %v1654_v52 }
 0x28c   : > { %v2530_v0 = vpop.eup %2529  ;;  %v1662_v27 = vrot.slane %v2528_v60, %v1661_v25  ;;  %v1650_v40 = vsel %vm1649_vm3, %v1648_v3, %v1643_v16 }
 0x28d   : > { %v2532_v4 = vpop.eup %2531  ;;  %v1669_v17 = vrot.slane %v2530_v0, %v1668_v59  ;;  %v1657_v22 = vsel %vm1656_vm4, %v1655_v6, %v1650_v40 }
 0x28e   : > { %v2534_v11 = vpop.eup %2533  ;;  %v1676_v38 = vrot.slane %v2532_v4, %v1675_v31  ;;  %v1664_v43 = vsel %vm1663_vm5, %v1662_v27, %v1657_v22 }
 0x28f   : > { %v2536_v14 = vpop.eup %2535  ;;  %v1683_v23 = vrot.slane %v2534_v11, %v1682_v7  ;;  %v1671_v29 = vsel %vm1670_vm6, %v1669_v17, %v1664_v43 }
 0x290   : > { %v2538_v18 = vpop.eup %2537  ;;  %v1690_v58 = vrot.slane %v2536_v14, %v1689_v44  ;;  %v1678_v35 = vsel %vm1677_vm7, %v1676_v38, %v1671_v29 }
 0x291   : > { %v2540_v20 = vpop.eup %2539  ;;  %v1697_v30 = vrot.slane %v2538_v18, %v1696_v37  ;;  %v1685_v33 = vsel %vm1684_vm8, %v1683_v23, %v1678_v35 }
 0x292   : > { %v2542_v26 = vpop.eup %2541  ;;  %v1704_v32 = vrot.slane %v2540_v20, %v1703_v51  ;;  %v1692_v41 = vsel %vm1691_vm9, %v1690_v58, %v1685_v33 }
 0x293   : > { %v1711_v36 = vrot.slane %v2542_v26, %v1710_v24  ;;  %v1699_v42 = vsel %vm1698_vm10, %v1697_v30, %v1692_v41 }
 0x294   : > { %v2544_v57 = vpop.eup %2543  ;;  %v1706_v46 = vsel %vm1705_vm11, %v1704_v32, %v1699_v42 }
 0x295   : > { %v1718_v1 = vrot.slane %v2544_v57, %v1717_v28  ;;  %v1713_v2 = vsel %vm1712_vm12, %v1711_v36, %v1706_v46 }
 0x297   : > { %v1720_v10 = vsel %vm1719_vm13, %v1718_v1, %v1713_v2 }
 0x298   : > { %v2546_v45 = vpop.eup %2545 }
 0x299   : > { %v1725_v47 = vrot.slane %v2546_v45, %v1724_v34 }
 0x29b   : > { %v1727_v39 = vsel %vm1726_vm14, %v1725_v47, %v1720_v10 }
 0x29c   : > { %1729 = vst [vmem:[%s221_s5] sm:$0x1] %v1727_v39 }
 0x29d   : > { %2586 = shalt.err (!%p2583_p0)
}
 0x29e   : > { %s2587_s9 = scalar_lea.hbm %s3348_s12, 16  ;;  %s2591_s11 = scalar_lea.hbm %s3389_s4, 32 }
 0x29f   : > { %p2588_p1 = scmp.ne.s32.totalorder %s3348_s12, %s2587_s9  ;;  %p2592_p4 = scmp.lt.s32.totalorder %s3348_s12, %s3389_s4 }
 0x2a0   : > { %p2593_p7 = scmp.lt.s32.totalorder %s2591_s11, %s2587_s9 }
 0x2a1   : > { %p2589_p2 = pnand %p2588_p1, %p2708_p5 }
 0x2a2   : > { %p2594_p6 = por %p2593_p7, %p2592_p4 }
 0x2a3   : > { %p2590_p3 = pneg %p2589_p2 }
 0x2a5   : > { %p2595_p8 = pnand %p2594_p6, %p2590_p3 }
 0x2a7   : > { %2598 = shalt.err (!%p2595_p8)
}
 0x2a8   : > { %2431 = dma.vmem_to_hbm [thread:$0]  (%p2708_p5), %s1744_s6, 16, %s3348_s12, %s1731_s13  }
 0x2a9 PF: > { %p2443_p9 = scmp.ge.s32.totalorder %s2637_s18, 2  ;;  %s1755_s30 = sand.u32 1, %s2625_s15  }
 0x2aa   : > { %p3393_p10 = scmp.ne.s32.totalorder %s3391_s26, 0  ;;  %s1756_s19 = scalar_lea.sflag [#allocation4], %s1755_s30 }
 0x2ac   : > { %p2438_p11 = pnand %p2443_p9, %p3393_p10 }
 0x2ae   : > { %p2439_p12 = pneg %p2438_p11 }
 0x2b0   : > { %2620 = dma.done.wait (%p2439_p12), %s1756_s19, 16  }
 0x2b1   : > { %2622 = vsyncadd (%p2439_p12), %s1756_s19, 4294967280  ;;  %p15_p13 = scmp.ge.s32.totalorder %s2695_s21, 4   ;;  %s3394_s15 = smov %s2629_s16 }
 0x2b2   : > { %s3395_s16 = smov %s2633_s17  ;;  %s3396_s17 = smov %s2706_s24 }
 0x2b3   : > { %s3397_s18 = smov %s2695_s21  ;;  %17 = sbr.rel (!%p15_p13) target bundleno = 4 (0x4), region = 79 }
 0x2b8   :  { %1760 = vsyncpa [#allocation3], 1 }
 0x2b9   :  { %1762 = vsyncpa [#allocation3 + $0x1], 1 }
 0x2ba   :  { %1763 = vsyncpa [#allocation4], 1 }
 0x2bb   :  { %1765 = vsyncpa [#allocation4 + $0x1], 1 }

</bundles_post_ra>
